<compile_context>
chip_gen: v7x
topology: tpu7x:2x2x1
jax: 0.10.0
libtpu: 0.0.40
codegen_flags: <defaults>
</compile_context>

<pallas_src>
import functools

import jax
import jax.numpy as jnp
from jax.experimental import pallas as pl
from jax.experimental.pallas import tpu as pltpu


# --------------------------------------------------------------------------
# Tensor-train weight construction (plain-JAX glue, deterministic init)
# --------------------------------------------------------------------------
TENSOR_SHAPE = (12, 8, 8, 8, 8, 12)   # from the module: [12, 8, 8, 8, 8, 12]
TENSOR_RANK = 10                      # from the module: ranks = 10
HIDDEN_SIZE = 12 * 8 * 8              # 768 (in_features == out_features)


def make_tt_cores(key):
    """Cores G_k of shape (r_{k-1}, s_k, r_k), ranks [1,10,10,10,10,10,1]."""
    ranks = (1,) + (TENSOR_RANK,) * (len(TENSOR_SHAPE) - 1) + (1,)
    cores = []
    keys = jax.random.split(key, len(TENSOR_SHAPE))
    for k, s in enumerate(TENSOR_SHAPE):
        shape = (ranks[k], s, ranks[k + 1])
        cores.append(0.3 * jax.random.normal(keys[k], shape, dtype=jnp.float32))
    return cores


def tt_full_weight(cores):
    """Contract TT cores to a dense (H_in, H_out) matrix."""
    full = cores[0][0]                                      # (s0, r1)
    for core in cores[1:]:
        full = jnp.einsum("pr,rsk->psk", full, core)
        full = full.reshape(-1, core.shape[-1])
    full = full.reshape(TENSOR_SHAPE)                       # (12,8,8,8,8,12)
    # first 3 modes -> input features, last 3 modes -> output features
    return full.reshape(HIDDEN_SIZE, HIDDEN_SIZE)           # (H_in, H_out)


# --------------------------------------------------------------------------
# Pallas kernel: fused  (x @ W + b) -> gelu_new -> residual add
# --------------------------------------------------------------------------
def _gelu_new(x):
    # HF "gelu_new": 0.5 * x * (1 + tanh(sqrt(2/pi) * (x + 0.044715 x^3)))
    return 0.5 * x * (1.0 + jnp.tanh(0.7978845608028654 * (x + 0.044715 * x * x * x)))


def adapter_kernel(x_ref, w_ref, b_ref, o_ref):
    # x_ref: (tm, H) f32 input rows
    # w_ref: (H, H)  bf16 weight (resident across the whole grid)
    # b_ref: (1, H)  f32 bias
    # o_ref: (tm, H) f32 output tile (full lane width, unmasked store)
    x = x_ref[...]                                          # f32, loaded once
    # bf16 MXU operands, f32 accumulation.
    y = jnp.dot(x.astype(jnp.bfloat16), w_ref[...],
                preferred_element_type=jnp.float32)
    y = y + b_ref[...]
    act = _gelu_new(y)                                      # f32 epilogue (EUP tanh)
    # Residual: the resident x tile itself (no extra HBM stream, no slicing).
    o_ref[...] = (x + act).astype(o_ref.dtype)


@functools.partial(jax.jit, static_argnames=("tm",))
def roberta_adapter_slt(hidden_states, weight, bias, *, tm=1024):
    """hidden_states: (B, S, H) float32.  weight: (H, H) f32. bias: (H,) f32."""
    B, S, H = hidden_states.shape
    M = B * S
    x2d = hidden_states.reshape(M, H)
    w_bf16 = weight.astype(jnp.bfloat16)              # cast once, halves W traffic
    b2d = bias.reshape(1, H).astype(jnp.float32)

    # Tile selection:
    #  * Large M: tm rows, full H width (~15 MB double-buffered at tm=1024).
    #  * M <= tm: split into TWO tiles when possible so both v7x TensorCores
    #    get work (harmless elsewhere); tiny M collapses to one step.
    if M <= tm:
        half = ((M + 1) // 2 + 7) // 8 * 8            # round_up(ceil(M/2), 8)
        tm_eff = half if (M > 8 and half < M) else M
    else:
        tm_eff = tm
    assert tm_eff == M or tm_eff % 8 == 0

    grid = (pl.cdiv(M, tm_eff),)                      # 1-D grid: M-tiles only

    cost = pl.CostEstimate(
        flops=2 * M * H * H,
        transcendentals=M * H,                        # one tanh per output element
        bytes_accessed=M * H * 4 + H * H * 2 + H * 4 + M * H * 4,
    )

    # Working set (double-buffered x/out + resident W): raise the scoped-VMEM
    # limit only when a large tm is requested; default tm=1024 fits the
    # 32 MiB default on every gen (incl. v7x's 64 MiB physical VMEM).
    vmem_bytes = 2 * (tm_eff * H * 4) * 2 + 2 * (H * H * 2) + (8 << 20)
    vmem_limit = vmem_bytes if vmem_bytes > (32 << 20) else None

    out2d = pl.pallas_call(
        adapter_kernel,
        out_shape=jax.ShapeDtypeStruct((M, H), hidden_states.dtype),
        grid=grid,
        in_specs=[
            pl.BlockSpec((tm_eff, H), lambda i: (i, 0)),    # x rows (streamed)
            pl.BlockSpec((H, H), lambda i: (0, 0)),         # W resident (fetched once)
            pl.BlockSpec((1, H), lambda i: (0, 0)),         # bias resident
        ],
        out_specs=pl.BlockSpec((tm_eff, H), lambda i: (i, 0)),
        compiler_params=pltpu.CompilerParams(
            dimension_semantics=("parallel",),              # M sharded across TCs
            vmem_limit_bytes=vmem_limit),
        cost_estimate=cost,
    )(x2d, w_bf16, b2d)

    return out2d.reshape(B, S, H)


# --------------------------------------------------------------------------
# Pure-JAX references (sanity check)
# --------------------------------------------------------------------------
def reference(hidden_states, weight, bias):
    y = jnp.einsum("bsh,ho->bso", hidden_states.astype(weight.dtype), weight,
                   preferred_element_type=jnp.float32) + bias
    return hidden_states + _gelu_new(y)


if __name__ == "__main__":
    key = jax.random.PRNGKey(0)
    k_x, k_cores, k_bias = jax.random.split(key, 3)

    # Small sequence; hidden size fixed by the module's tensor shape (12*8*8 = 768).
    B, S, H = 2, 8, HIDDEN_SIZE
    hidden_states = jax.random.normal(k_x, (B, S, H), dtype=jnp.float32)

    cores = make_tt_cores(k_cores)
    weight = tt_full_weight(cores)                                   # (H, H)
    bias = 0.02 * jax.random.normal(k_bias, (H,), dtype=jnp.float32)

    out = roberta_adapter_slt(hidden_states, weight, bias)
    out = jax.block_until_ready(out)
    assert out.shape == (B, S, H)

    # 1) Tight check against a reference with the same numeric path
    #    (bf16 MXU operands, f32 accumulation/epilogue).
    ref_bf16 = reference(hidden_states, weight.astype(jnp.bfloat16), bias)
    assert jnp.allclose(out, ref_bf16, atol=2e-2, rtol=2e-2), (
        float(jnp.max(jnp.abs(out - ref_bf16))))

    # 2) Loose check against the full-f32 module semantics (bf16 operand
    #    rounding over a K=768 contraction -> ~1e-2 relative).
    ref_f32 = reference(hidden_states, weight, bias)
    rel_err = jnp.max(jnp.abs(out - ref_f32) / (jnp.abs(ref_f32) + 1.0))
    assert rel_err < 0.1, float(rel_err)

    print("KERNEL_OK")
</pallas_src>

<mosaic_0001>
module attributes {stable_mosaic.version = 11 : i64} {
  func.func @adapter_kernel(%arg0: i32, %arg1: memref<8x768xf32, #tpu.memory_space<vmem>>, %arg2: memref<768x768xbf16, #tpu.memory_space<vmem>>, %arg3: memref<1x768xf32, #tpu.memory_space<vmem>>, %arg4: memref<8x768xf32, #tpu.memory_space<vmem>>) attributes {dimension_semantics = [#tpu.dimension_semantics<parallel>], iteration_bounds = array<i64: 2>, scalar_prefetch = 0 : i64, scratch_operands = 0 : i64, tpu.core_type = #tpu.core_type<tc>, window_params = [{transform_indices = @transform_0, window_bounds = array<i64: 8, 768>}, {pipeline_mode = #tpu.pipeline_mode<synchronous>, transform_indices = @transform_1, window_bounds = array<i64: 768, 768>}, {pipeline_mode = #tpu.pipeline_mode<synchronous>, transform_indices = @transform_2, window_bounds = array<i64: 1, 768>}, {transform_indices = @transform_3, window_bounds = array<i64: 8, 768>}]} {
    %c0 = arith.constant 0 : index
    %c0_0 = arith.constant 0 : index
    %0 = vector.load %arg1[%c0, %c0_0] : memref<8x768xf32, #tpu.memory_space<vmem>>, vector<8x768xf32>
    %1 = arith.truncf %0 : vector<8x768xf32> to vector<8x768xbf16>
    %c0_1 = arith.constant 0 : index
    %c0_2 = arith.constant 0 : index
    %2 = vector.load %arg2[%c0_1, %c0_2] : memref<768x768xbf16, #tpu.memory_space<vmem>>, vector<768x768xbf16>
    %cst = arith.constant dense<0.000000e+00> : vector<8x768xf32>
    %3 = tpu.matmul %1, %2, %cst {dimension_numbers = #tpu.dot_dimension_numbers<[1], [0], [0], [1], [0, 0, 1, 1], [], []>} : vector<8x768xbf16>, vector<768x768xbf16>, vector<8x768xf32> -> vector<8x768xf32>
    %c0_3 = arith.constant 0 : index
    %c0_4 = arith.constant 0 : index
    %4 = vector.load %arg3[%c0_3, %c0_4] : memref<1x768xf32, #tpu.memory_space<vmem>>, vector<1x768xf32>
    %5 = vector.broadcast %4 : vector<1x768xf32> to vector<8x768xf32>
    %6 = arith.addf %3, %5 : vector<8x768xf32>
    %cst_5 = arith.constant 5.000000e-01 : f32
    %7 = vector.broadcast %cst_5 : f32 to vector<8x768xf32>
    %8 = arith.mulf %7, %6 : vector<8x768xf32>
    %cst_6 = arith.constant 4.471500e-02 : f32
    %9 = vector.broadcast %cst_6 : f32 to vector<8x768xf32>
    %10 = arith.mulf %9, %6 : vector<8x768xf32>
    %11 = arith.mulf %10, %6 : vector<8x768xf32>
    %12 = arith.mulf %11, %6 : vector<8x768xf32>
    %13 = arith.addf %6, %12 : vector<8x768xf32>
    %cst_7 = arith.constant 0.797884583 : f32
    %14 = vector.broadcast %cst_7 : f32 to vector<8x768xf32>
    %15 = arith.mulf %14, %13 : vector<8x768xf32>
    %16 = math.tanh %15 : vector<8x768xf32>
    %cst_8 = arith.constant 1.000000e+00 : f32
    %17 = vector.broadcast %cst_8 : f32 to vector<8x768xf32>
    %18 = arith.addf %17, %16 : vector<8x768xf32>
    %19 = arith.mulf %8, %18 : vector<8x768xf32>
    %20 = arith.addf %0, %19 : vector<8x768xf32>
    %c0_9 = arith.constant 0 : index
    %c0_10 = arith.constant 0 : index
    %21 = vector.load %arg4[%c0_9, %c0_10] : memref<8x768xf32, #tpu.memory_space<vmem>>, vector<8x768xf32>
    tpu.vector_store %arg4[%c0_9, %c0_10], %20 {strides = array<i32>} : memref<8x768xf32, #tpu.memory_space<vmem>>, vector<8x768xf32>,
    return
  }
  func.func @transform_0(%arg0: i32) -> (i32, i32) {
    %c0_i32 = arith.constant 0 : i32
    %c0_i32_0 = arith.constant 0 : i32
    return %arg0, %c0_i32 : i32, i32
  }
  func.func @transform_1(%arg0: i32) -> (i32, i32) {
    %c0_i32 = arith.constant 0 : i32
    %c0_i32_0 = arith.constant 0 : i32
    %c0_i32_1 = arith.constant 0 : i32
    return %c0_i32, %c0_i32_0 : i32, i32
  }
  func.func @transform_2(%arg0: i32) -> (i32, i32) {
    %c0_i32 = arith.constant 0 : i32
    %c0_i32_0 = arith.constant 0 : i32
    %c0_i32_1 = arith.constant 0 : i32
    return %c0_i32, %c0_i32_0 : i32, i32
  }
  func.func @transform_3(%arg0: i32) -> (i32, i32) {
    %c0_i32 = arith.constant 0 : i32
    %c0_i32_0 = arith.constant 0 : i32
    return %arg0, %c0_i32 : i32, i32
  }
}

</mosaic_0001>

<bundles_post_ra>
// kernel: roberta_adapter_slt.1
= control target key start
LH: loop header
LB: loop body
LE: loop exit
PB: predicated region body
PF: predicated region fallthrough
CT: control target
= control target key end

     0   :  { %8 = vsyncpa [#allocation3], 0  ;;  %s4391_s0 = inlined_call_operand.vmem [shape: f32[16,768], index: 0, kind: input, shape index: {}]   ;;  %s4392_s1 = inlined_call_operand.vmem [shape: bf16[768,768], index: 1, kind: input, shape index: {}]   ;;  %s4393_s2 = inlined_call_operand.vmem [shape: f32[1,768], index: 2, kind: input, shape index: {}]   ;;  %s4394_s3 = inlined_call_operand.hbm [shape: f32[16,768], index: 3, kind: output, shape index: {}]  }
   0x1   :  { %10 = vsyncpa [#allocation3 + $0x1], 0  ;;  %s3351_s12 = smov 0   ;;  %s3353_s13 = smov 0  }
   0x2   :  { %s3355_s14 = smov 0   ;;  %s3357_s15 = smov 0  }
   0x3 LB: > { %s3372_s16 = sadd.s32 4294967295, %s3328_s15   ;;  %s2450_s17 = sadd.s32 4294967294, %s3328_s15   ;;  %s3328_s15 = sphi %s3357_s15, %s4400_s15   ;;  %s3324_s14 = sphi %s3355_s14, %s4399_s14   ;;  %s3320_s13 = sphi %s3353_s13, %s4398_s13   ;;  %s3316_s12 = sphi %s3351_s12, %s4397_s12  }
   0x4   : > { %s3376_s18 = sadd.s32 1, %s3328_s15   ;;  %s91_s19 = sadd.s32 1, %s3324_s14 }
   0x5   : > { %s88_s20 = ssub.s32 %s3328_s15, %s3376_s18  ;;  %p101_p0 = scmp.ne.s32.totalorder %s3324_s14, %s3320_s13 }
   0x6   : > { %p89_p1 = scmp.eq.s32.totalorder %s88_s20, 0  ;;  %p102_p2 = scmp.eq.s32.totalorder %s3372_s16, 1 }
   0x7   : > { %p107_p3 = scmp.ne.s32.totalorder %s3320_s13, %s3316_s12  ;;  %p108_p4 = scmp.eq.s32.totalorder %s2450_s17, 1 }
   0x8   : > { %s3387_s21 = scalar_select %p89_p1, %s3324_s14, %s91_s19  }
   0x9   : > { %p3389_p5 = por %p102_p2, %p101_p0  ;;  %p3393_p6 = por %p108_p4, %p107_p3 }
   0xa   : > { %p2453_p7 = scmp.ge.s32.totalorder %s3328_s15, 1  ;;  %p140_p8 = scmp.lt.s32.totalorder %s3328_s15, 3 }
   0xc   : > { %p141_p9 = pnand %p2453_p7, %p140_p8 }
   0xd   : > { %v2816_v0 = vld [vmem:[%s4392_s1 + $0x4] ss:$24 sps:$4 sm:$0xff] (!%p141_p9)   ;;  %v2820_v2 = vld [vmem:[%s4392_s1] ss:$24 sps:$4 sm:$0xff] (!%p141_p9)   ;;  %v2822_v4 = vld [vmem:[%s4392_s1 + $0x34] ss:$24 sps:$4 sm:$0xff] (!%p141_p9)  }
   0xe   : > { %144 = sbr.rel (%p141_p9) target bundleno = 591 (0x24f), region = 32  ;;  %v2818_v1 = vld [vmem:[%s4392_s1 + $0x304] ss:$24 sps:$4 sm:$0xff] (!%p141_p9)   ;;  %1941 = vmatprep.subr.bf16.mxu1 (!%p141_p9), %v2816_v0  ;;  %v2821_v3 = vld [vmem:[%s4392_s1 + $0x300] ss:$24 sps:$4 sm:$0xff] (!%p141_p9)   ;;  %p164_p10 = scmp.lt.s32.totalorder (!%p141_p9), %s3372_s16, 1 }
   0xf   : > { %1982 = vmatprep.subr.bf16.mxu0 (!%p141_p9), %v2818_v1  ;;  %1942 = vmatpush1.bf16.msra.mxu1 (!%p141_p9), %v2820_v2  ;;  %v2824_v5 = vld [vmem:[%s4392_s1 + $0x334] ss:$24 sps:$4 sm:$0xff] (!%p141_p9)   ;;  %v2826_v6 = vld [vmem:[%s4392_s1 + $0x30] ss:$24 sps:$4 sm:$0xff] (!%p141_p9)   ;;  %v2828_v8 = vld [vmem:[%s4392_s1 + $0x64] ss:$24 sps:$4 sm:$0xff] (!%p141_p9)  }
  0x10   : > { %1983 = vmatpush1.bf16.msra.mxu0 (!%p141_p9), %v2821_v3  ;;  %1943 = vmatprep.subr.bf16.mxu1 (!%p141_p9), %v2822_v4  ;;  %v2827_v7 = vld [vmem:[%s4392_s1 + $0x330] ss:$24 sps:$4 sm:$0xff] (!%p141_p9)   ;;  %v2830_v9 = vld [vmem:[%s4392_s1 + $0x364] ss:$24 sps:$4 sm:$0xff] (!%p141_p9)   ;;  %v2832_v10 = vld [vmem:[%s4392_s1 + $0x60] ss:$24 sps:$4 sm:$0xff] (!%p141_p9)  }
  0x11   : > { %1984 = vmatprep.subr.bf16.mxu0 (!%p141_p9), %v2824_v5  ;;  %v2833_v11 = vld [vmem:[%s4392_s1 + $0x360] ss:$24 sps:$4 sm:$0xff] (!%p141_p9)   ;;  %v2834_v12 = vld [vmem:[%s4392_s1 + $0x94] ss:$24 sps:$4 sm:$0xff] (!%p141_p9)   ;;  %v2838_v14 = vld [vmem:[%s4392_s1 + $0x90] ss:$24 sps:$4 sm:$0xff] (!%p141_p9)  }
  0x12   : > { %v2836_v13 = vld [vmem:[%s4392_s1 + $0x394] ss:$24 sps:$4 sm:$0xff] (!%p141_p9)   ;;  %v2839_v15 = vld [vmem:[%s4392_s1 + $0x390] ss:$24 sps:$4 sm:$0xff] (!%p141_p9)   ;;  %v2840_v16 = vld [vmem:[%s4392_s1 + $0xc4] ss:$24 sps:$4 sm:$0xff] (!%p141_p9)  }
  0x13   : > { %1944 = vmatpush1.bf16.msra.mxu1 (!%p141_p9), %v2826_v6  ;;  %v2842_v17 = vld [vmem:[%s4392_s1 + $0x3c4] ss:$24 sps:$4 sm:$0xff] (!%p141_p9)   ;;  %v2844_v18 = vld [vmem:[%s4392_s1 + $0xc0] ss:$24 sps:$4 sm:$0xff] (!%p141_p9)   ;;  %v2846_v20 = vld [vmem:[%s4392_s1 + $0xf4] ss:$24 sps:$4 sm:$0xff] (!%p141_p9)  }
  0x14   : > { %1985 = vmatpush1.bf16.msra.mxu0 (!%p141_p9), %v2827_v7  ;;  %1945 = vmatprep.subr.bf16.mxu1 (!%p141_p9), %v2828_v8  ;;  %v2845_v19 = vld [vmem:[%s4392_s1 + $0x3c0] ss:$24 sps:$4 sm:$0xff] (!%p141_p9)   ;;  %v2848_v21 = vld [vmem:[%s4392_s1 + $0x3f4] ss:$24 sps:$4 sm:$0xff] (!%p141_p9)   ;;  %v2850_v22 = vld [vmem:[%s4392_s1 + $0xf0] ss:$24 sps:$4 sm:$0xff] (!%p141_p9)  }
  0x15   : > { %1986 = vmatprep.subr.bf16.mxu0 %v2830_v9  ;;  %v2851_v23 = vld [vmem:[%s4392_s1 + $0x3f0] ss:$24 sps:$4 sm:$0xff]   ;;  %v2852_v24 = vld [vmem:[%s4392_s1 + $0x124] ss:$24 sps:$4 sm:$0xff]   ;;  %v2856_v26 = vld [vmem:[%s4392_s1 + $0x120] ss:$24 sps:$4 sm:$0xff]  }
  0x16   : > { %v2854_v25 = vld [vmem:[%s4392_s1 + $0x424] ss:$24 sps:$4 sm:$0xff]   ;;  %v2857_v27 = vld [vmem:[%s4392_s1 + $0x420] ss:$24 sps:$4 sm:$0xff]   ;;  %v2858_v28 = vld [vmem:[%s4392_s1 + $0x154] ss:$24 sps:$4 sm:$0xff]  }
  0x17   : > { %1946 = vmatpush1.bf16.msra.mxu1 %v2832_v10  ;;  %v2860_v29 = vld [vmem:[%s4392_s1 + $0x454] ss:$24 sps:$4 sm:$0xff]   ;;  %v2862_v30 = vld [vmem:[%s4392_s1 + $0x150] ss:$24 sps:$4 sm:$0xff]   ;;  %v2864_v32 = vld [vmem:[%s4392_s1 + $0x184] ss:$24 sps:$4 sm:$0xff]  }
  0x18   : > { %1987 = vmatpush1.bf16.msra.mxu0 %v2833_v11  ;;  %1947 = vmatprep.subr.bf16.mxu1 %v2834_v12  ;;  %v2863_v31 = vld [vmem:[%s4392_s1 + $0x450] ss:$24 sps:$4 sm:$0xff]   ;;  %v2866_v33 = vld [vmem:[%s4392_s1 + $0x484] ss:$24 sps:$4 sm:$0xff]   ;;  %v2868_v34 = vld [vmem:[%s4392_s1 + $0x180] ss:$24 sps:$4 sm:$0xff]  }
  0x19   : > { %1988 = vmatprep.subr.bf16.mxu0 %v2836_v13  ;;  %v2869_v35 = vld [vmem:[%s4392_s1 + $0x480] ss:$24 sps:$4 sm:$0xff]   ;;  %s165_s24 = scalar_select %p164_p10, %s3372_s16, 1  ;;  %v2870_v36 = vld [vmem:[%s4392_s1 + $0x1b4] ss:$24 sps:$4 sm:$0xff]  }
  0x1a   : > { %v2872_v37 = vld [vmem:[%s4392_s1 + $0x4b4] ss:$24 sps:$4 sm:$0xff]   ;;  %v2874_v38 = vld [vmem:[%s4392_s1 + $0x1b0] ss:$24 sps:$4 sm:$0xff]   ;;  %v2876_v40 = vld [vmem:[%s4392_s1 + $0x1e4] ss:$24 sps:$4 sm:$0xff]  }
  0x1b   : > { %1948 = vmatpush1.bf16.msra.mxu1 %v2838_v14  ;;  %s2775_s4 = smul.u32 48, %s165_s24  ;;  %v2875_v39 = vld [vmem:[%s4392_s1 + $0x4b0] ss:$24 sps:$4 sm:$0xff]   ;;  %v2878_v41 = vld [vmem:[%s4392_s1 + $0x4e4] ss:$24 sps:$4 sm:$0xff]   ;;  %s161_s20 = sand.u32 1, %s3320_s13  }
  0x1c   : > { %1989 = vmatpush1.bf16.msra.mxu0 %v2839_v15  ;;  %1949 = vmatprep.subr.bf16.mxu1 %v2840_v16  ;;  %v2880_v42 = vld [vmem:[%s4392_s1 + $0x1e0] ss:$24 sps:$4 sm:$0xff]   ;;  %v2882_v44 = vld [vmem:[%s4392_s1 + $0x214] ss:$24 sps:$4 sm:$0xff]   ;;  %v2886_v49 = vld [vmem:[%s4392_s1 + $0x210] ss:$24 sps:$4 sm:$0xff]  }
  0x1d   : > { %1990 = vmatprep.subr.bf16.mxu0 %v2842_v17  ;;  %v2881_v43 = vld [vmem:[%s4392_s1 + $0x4e0] ss:$24 sps:$4 sm:$0xff]   ;;  %s3536_s26 = scalar_lea.vmem %s4391_s0, %s2775_s4  ;;  %v2884_v45 = vld [vmem:[%s4392_s1 + $0x514] ss:$24 sps:$4 sm:$0xff]   ;;  %v2887_v50 = vld [vmem:[%s4392_s1 + $0x510] ss:$24 sps:$4 sm:$0xff]  }
  0x1e   : > { %v170_v46 = vld [vmem:[%s3536_s26 + $0x8] sm:$0xff]  ;;  %v172_v48 = vld [vmem:[%s3536_s26 + $0x18] sm:$0xff]  ;;  %v169_v5 = vld [vmem:[%s3536_s26] sm:$0xff]  ;;  %s2774_s24 = smul.u32 48, %s161_s20 }
  0x1f   : > { %1950 = vmatpush1.bf16.msra.mxu1 %v2844_v18  ;;  %v3545_v47 = vpack.c.bf16 %v170_v46, %v170_v46  ;;  %v3554_v51 = vpack.c.bf16 %v172_v48, %v172_v48  ;;  %v2888_v52 = vld [vmem:[%s4392_s1 + $0x244] ss:$24 sps:$4 sm:$0xff]   ;;  %v2892_v54 = vld [vmem:[%s4392_s1 + $0x240] ss:$24 sps:$4 sm:$0xff]   ;;  %v2894_v56 = vld [vmem:[%s4392_s1 + $0x274] ss:$24 sps:$4 sm:$0xff]   ;;  %v3620_v10 = vpack.c.bf16 %v169_v5, %v169_v5 }
  0x20   : > { %1991 = vmatpush1.bf16.msra.mxu0 %v2845_v19  ;;  %1951 = vmatprep.subr.bf16.mxu1 %v2846_v20  ;;  %v2890_v53 = vld [vmem:[%s4392_s1 + $0x544] ss:$24 sps:$4 sm:$0xff]   ;;  %v2893_v55 = vld [vmem:[%s4392_s1 + $0x540] ss:$24 sps:$4 sm:$0xff]   ;;  %v2896_v57 = vld [vmem:[%s4392_s1 + $0x574] ss:$24 sps:$4 sm:$0xff]  }
  0x21   : > { %1992 = vmatprep.subr.bf16.mxu0 %v2848_v21  ;;  %1973 = vmatprep.mubr.bf16.mxu1 %v3545_v47  ;;  %v2898_v58 = vld [vmem:[%s4392_s1 + $0x270] ss:$24 sps:$4 sm:$0xff]   ;;  %v2900_v60 = vld [vmem:[%s4392_s1 + $0x2a4] ss:$24 sps:$4 sm:$0xff]   ;;  %v2904_v62 = vld [vmem:[%s4392_s1 + $0x2a0] ss:$24 sps:$4 sm:$0xff]  }
  0x22   : > { %2014 = vmatprep.mubr.bf16.mxu0 %v3554_v51  ;;  %v2899_v59 = vld [vmem:[%s4392_s1 + $0x570] ss:$24 sps:$4 sm:$0xff]   ;;  %v2902_v61 = vld [vmem:[%s4392_s1 + $0x5a4] ss:$24 sps:$4 sm:$0xff]   ;;  %v2905_v63 = vld [vmem:[%s4392_s1 + $0x5a0] ss:$24 sps:$4 sm:$0xff]  }
  0x23   : > { %1952 = vmatpush1.bf16.msra.mxu1 %v2850_v22  ;;  %v2906_v0 = vld [vmem:[%s4392_s1 + $0x2d4] ss:$24 sps:$4 sm:$0xff]   ;;  %v2910_v2 = vld [vmem:[%s4392_s1 + $0x2d0] ss:$24 sps:$4 sm:$0xff]   ;;  %v2914_v4 = vld [vmem:[%s4392_s1 + $0x604] ss:$24 sps:$4 sm:$0xff]  }
  0x24   : > { %1993 = vmatpush1.bf16.msra.mxu0 %v2851_v23  ;;  %1953 = vmatprep.subr.bf16.mxu1 %v2852_v24  ;;  %v2908_v1 = vld [vmem:[%s4392_s1 + $0x5d4] ss:$24 sps:$4 sm:$0xff]   ;;  %v2911_v3 = vld [vmem:[%s4392_s1 + $0x5d0] ss:$24 sps:$4 sm:$0xff]   ;;  %v2912_v8 = vld [vmem:[%s4392_s1 + $0x600] ss:$24 sps:$4 sm:$0xff]  }
  0x25   : > { %1994 = vmatprep.subr.bf16.mxu0 %v2854_v25  ;;  %v171_v6 = vld [vmem:[%s3536_s26 + $0x10] sm:$0xff]  ;;  %v2917_v7 = vld [vmem:[%s4392_s1 + $0xc] ss:$24 sps:$4 sm:$0xff]   ;;  %v2915_v9 = vld [vmem:[%s4392_s1 + $0x8] ss:$24 sps:$4 sm:$0xff]   ;;  %s4322_s25 = scalar_lea.vmem [#allocation2], %s2774_s24 }
  0x26   : > { %v3622_v11 = vpack.c.bf16 %v171_v6, %v171_v6  ;;  %v2920_v12 = vld [vmem:[%s4392_s1 + $0x634] ss:$24 sps:$4 sm:$0xff]   ;;  %v2918_v14 = vld [vmem:[%s4392_s1 + $0x630] ss:$24 sps:$4 sm:$0xff]   ;;  %v2926_v16 = vld [vmem:[%s4392_s1 + $0x664] ss:$24 sps:$4 sm:$0xff]  }
  0x27   : > { %1954 = vmatpush1.bf16.msra.mxu1 %v2856_v26  ;;  %v2923_v13 = vld [vmem:[%s4392_s1 + $0x3c] ss:$24 sps:$4 sm:$0xff]   ;;  %v2921_v15 = vld [vmem:[%s4392_s1 + $0x38] ss:$24 sps:$4 sm:$0xff]   ;;  %v2929_v17 = vld [vmem:[%s4392_s1 + $0x6c] ss:$24 sps:$4 sm:$0xff]  }
  0x28   : > { %1995 = vmatpush1.bf16.msra.mxu0 %v2857_v27  ;;  %1955 = vmatprep.subr.bf16.mxu1 %v2858_v28  ;;  %v2924_v18 = vld [vmem:[%s4392_s1 + $0x660] ss:$24 sps:$4 sm:$0xff]   ;;  %v2932_v20 = vld [vmem:[%s4392_s1 + $0x694] ss:$24 sps:$4 sm:$0xff]   ;;  %v2930_v22 = vld [vmem:[%s4392_s1 + $0x690] ss:$24 sps:$4 sm:$0xff]  }
  0x29   : > { %1996 = vmatprep.subr.bf16.mxu0 %v2860_v29  ;;  %v2927_v19 = vld [vmem:[%s4392_s1 + $0x68] ss:$24 sps:$4 sm:$0xff]   ;;  %v2935_v21 = vld [vmem:[%s4392_s1 + $0x9c] ss:$24 sps:$4 sm:$0xff]   ;;  %v2933_v23 = vld [vmem:[%s4392_s1 + $0x98] ss:$24 sps:$4 sm:$0xff]  }
  0x2a   : > { %v2938_v24 = vld [vmem:[%s4392_s1 + $0x6c4] ss:$24 sps:$4 sm:$0xff]   ;;  %v2936_v26 = vld [vmem:[%s4392_s1 + $0x6c0] ss:$24 sps:$4 sm:$0xff]   ;;  %v2944_v28 = vld [vmem:[%s4392_s1 + $0x6f4] ss:$24 sps:$4 sm:$0xff]  }
  0x2b   : > { %1956 = vmatpush1.bf16.msra.mxu1 %v2862_v30  ;;  %v2941_v25 = vld [vmem:[%s4392_s1 + $0xcc] ss:$24 sps:$4 sm:$0xff]   ;;  %v2939_v27 = vld [vmem:[%s4392_s1 + $0xc8] ss:$24 sps:$4 sm:$0xff]   ;;  %v2947_v29 = vld [vmem:[%s4392_s1 + $0xfc] ss:$24 sps:$4 sm:$0xff]  }
  0x2c   : > { %1997 = vmatpush1.bf16.msra.mxu0 %v2863_v31  ;;  %1957 = vmatprep.subr.bf16.mxu1 %v2864_v32  ;;  %v2942_v30 = vld [vmem:[%s4392_s1 + $0x6f0] ss:$24 sps:$4 sm:$0xff]   ;;  %v2950_v32 = vld [vmem:[%s4392_s1 + $0x724] ss:$24 sps:$4 sm:$0xff]   ;;  %v2968_v46 = vld [vmem:[%s4392_s1 + $0x7b4] ss:$24 sps:$4 sm:$0xff]  }
  0x2d   : > { %1998 = vmatprep.subr.bf16.mxu0 %v2866_v33  ;;  %v2945_v31 = vld [vmem:[%s4392_s1 + $0xf8] ss:$24 sps:$4 sm:$0xff]   ;;  %v2953_v33 = vld [vmem:[%s4392_s1 + $0x12c] ss:$24 sps:$4 sm:$0xff]   ;;  %v2971_v48 = vld [vmem:[%s4392_s1 + $0x1bc] ss:$24 sps:$4 sm:$0xff]  }
  0x2e   : > { %v3001_v5 = vld [vmem:[%s4392_s1 + $0x2ac] ss:$24 sps:$4 sm:$0xff]   ;;  %v2996_v6 = vld [vmem:[%s4392_s1 + $0x8a0] ss:$24 sps:$4 sm:$0xff]   ;;  %s2776_s27 = smul.u32 768, %s3372_s16  ;;  %s2391_s28 = sshll.u32 %s4322_s25, 4  ;;  %s4347_s28 = int_to_ptr.vmem [resolvable:$true] %s2391_s28 }
  0x2f   : > { %1958 = vmatpush1.bf16.msra.mxu1 %v2868_v34  ;;  %v174_v34 = vld [vmem:[%s3536_s26 + $0x28] sm:$0xff]  ;;  %s2377_s16 = scalar_lea.sflag [#allocation3], %s161_s20  ;;  %s3266_s5 = scalar_lea.vmem %s4347_s28, 768 }
  0x30   : > { %1999 = vmatpush1.bf16.msra.mxu0 %v2869_v35  ;;  %1959 = vmatprep.subr.bf16.mxu1 %v2870_v36  ;;  %v3694_v35 = vpack.c.bf16 %v174_v34, %v174_v34  ;;  %v2948_v36 = vld [vmem:[%s4392_s1 + $0x720] ss:$24 sps:$4 sm:$0xff]   ;;  %v3035_v34 = vld [vmem:[%s4392_s1 + $0xd0] ss:$24 sps:$4 sm:$0xff]   ;;  %s4345_s4 = scalar_lea.hbm %s4394_s3, %s2776_s27  ;;  %p3267_p11 = scmp.ne.s32.totalorder %s4347_s28, %s3266_s5 }
  0x31   : > { %2000 = vmatprep.subr.bf16.mxu0 %v2872_v37  ;;  %v2951_v37 = vld [vmem:[%s4392_s1 + $0x128] ss:$24 sps:$4 sm:$0xff]  }
  0x32   : > { %p3268_p12 = pnand %p3267_p11, %p3389_p5 }
  0x33   : > { %1960 = vmatpush1.bf16.msra.mxu1 %v2874_v38  ;;  %v2956_v38 = vld [vmem:[%s4392_s1 + $0x754] ss:$24 sps:$4 sm:$0xff]  }
  0x34   : > { %2001 = vmatpush1.bf16.msra.mxu0 %v2875_v39  ;;  %1961 = vmatprep.subr.bf16.mxu1 %v2876_v40  ;;  %v2959_v39 = vld [vmem:[%s4392_s1 + $0x15c] ss:$24 sps:$4 sm:$0xff]   ;;  %v2954_v40 = vld [vmem:[%s4392_s1 + $0x750] ss:$24 sps:$4 sm:$0xff]   ;;  %p3269_p13 = pneg %p3268_p12 }
  0x35   : > { %2002 = vmatprep.subr.bf16.mxu0 %v2878_v41  ;;  %v2957_v41 = vld [vmem:[%s4392_s1 + $0x158] ss:$24 sps:$4 sm:$0xff]  }
  0x37   : > { %1962 = vmatpush1.bf16.msra.mxu1 %v2880_v42  ;;  %v2962_v42 = vld [vmem:[%s4392_s1 + $0x784] ss:$24 sps:$4 sm:$0xff]  }
  0x38   : > { %2003 = vmatpush1.bf16.msra.mxu0 %v2881_v43  ;;  %1963 = vmatprep.subr.bf16.mxu1 %v2882_v44  ;;  %v2965_v43 = vld [vmem:[%s4392_s1 + $0x18c] ss:$24 sps:$4 sm:$0xff]   ;;  %v2960_v44 = vld [vmem:[%s4392_s1 + $0x780] ss:$24 sps:$4 sm:$0xff]  }
  0x39   : > { %2004 = vmatprep.subr.bf16.mxu0 %v2884_v45  ;;  %v2963_v45 = vld [vmem:[%s4392_s1 + $0x188] ss:$24 sps:$4 sm:$0xff]  }
  0x3b   : > { %1964 = vmatpush1.bf16.msra.mxu1 %v2886_v49  ;;  %v2966_v49 = vld [vmem:[%s4392_s1 + $0x7b0] ss:$24 sps:$4 sm:$0xff]  }
  0x3c   : > { %2005 = vmatpush1.bf16.msra.mxu0 %v2887_v50  ;;  %1965 = vmatprep.subr.bf16.mxu1 %v2888_v52  ;;  %v2969_v50 = vld [vmem:[%s4392_s1 + $0x1b8] ss:$24 sps:$4 sm:$0xff]   ;;  %v2974_v52 = vld [vmem:[%s4392_s1 + $0x7e4] ss:$24 sps:$4 sm:$0xff]  }
  0x3d   : > { %2006 = vmatprep.subr.bf16.mxu0 %v2890_v53  ;;  %v2977_v53 = vld [vmem:[%s4392_s1 + $0x1ec] ss:$24 sps:$4 sm:$0xff]  }
  0x3f   : > { %1966 = vmatpush1.bf16.msra.mxu1 %v2892_v54  ;;  %v2972_v54 = vld [vmem:[%s4392_s1 + $0x7e0] ss:$24 sps:$4 sm:$0xff]  }
  0x40   : > { %2007 = vmatpush1.bf16.msra.mxu0 %v2893_v55  ;;  %1967 = vmatprep.subr.bf16.mxu1 %v2894_v56  ;;  %v2975_v55 = vld [vmem:[%s4392_s1 + $0x1e8] ss:$24 sps:$4 sm:$0xff]   ;;  %v2980_v56 = vld [vmem:[%s4392_s1 + $0x814] ss:$24 sps:$4 sm:$0xff]  }
  0x41   : > { %2008 = vmatprep.subr.bf16.mxu0 %v2896_v57  ;;  %v2983_v57 = vld [vmem:[%s4392_s1 + $0x21c] ss:$24 sps:$4 sm:$0xff]  }
  0x43   : > { %1968 = vmatpush1.bf16.msra.mxu1 %v2898_v58  ;;  %v2978_v58 = vld [vmem:[%s4392_s1 + $0x810] ss:$24 sps:$4 sm:$0xff]  }
  0x44   : > { %2009 = vmatpush1.bf16.msra.mxu0 %v2899_v59  ;;  %1969 = vmatprep.subr.bf16.mxu1 %v2900_v60  ;;  %v2981_v59 = vld [vmem:[%s4392_s1 + $0x218] ss:$24 sps:$4 sm:$0xff]   ;;  %v2986_v60 = vld [vmem:[%s4392_s1 + $0x844] ss:$24 sps:$4 sm:$0xff]  }
  0x45   : > { %2010 = vmatprep.subr.bf16.mxu0 %v2902_v61  ;;  %v2989_v61 = vld [vmem:[%s4392_s1 + $0x24c] ss:$24 sps:$4 sm:$0xff]  }
  0x47   : > { %1970 = vmatpush1.bf16.msra.mxu1 %v2904_v62  ;;  %v2984_v62 = vld [vmem:[%s4392_s1 + $0x840] ss:$24 sps:$4 sm:$0xff]  }
  0x48   : > { %2011 = vmatpush1.bf16.msra.mxu0 %v2905_v63  ;;  %1971 = vmatprep.subr.bf16.mxu1 %v2906_v0  ;;  %v2987_v63 = vld [vmem:[%s4392_s1 + $0x248] ss:$24 sps:$4 sm:$0xff]   ;;  %v2992_v0 = vld [vmem:[%s4392_s1 + $0x874] ss:$24 sps:$4 sm:$0xff]  }
  0x49   : > { %2012 = vmatprep.subr.bf16.mxu0 %v2908_v1  ;;  %v2995_v1 = vld [vmem:[%s4392_s1 + $0x27c] ss:$24 sps:$4 sm:$0xff]  }
  0x4b   : > { %1972 = vmatpush1.bf16.msra.mxu1 %v2910_v2  ;;  %v2990_v2 = vld [vmem:[%s4392_s1 + $0x870] ss:$24 sps:$4 sm:$0xff]  }
  0x4c   : > { %2013 = vmatpush1.bf16.msra.mxu0 %v2911_v3  ;;  %2064 = vmatprep.subr.bf16.mxu1 %v2917_v7  ;;  %v2993_v3 = vld [vmem:[%s4392_s1 + $0x278] ss:$24 sps:$4 sm:$0xff]   ;;  %v2999_v7 = vld [vmem:[%s4392_s1 + $0x2a8] ss:$24 sps:$4 sm:$0xff]  }
  0x4d   : > { %2023 = vmatprep.subr.bf16.mxu0 %v2914_v4  ;;  %v2998_v4 = vld [vmem:[%s4392_s1 + $0x8a4] ss:$24 sps:$4 sm:$0xff]  }
  0x4e   : > { %1974 = vmatmul.mubr.bf16.vlgmr.msra.gmra.mrb[0].mxu1 %v3620_v10 }
  0x4f   : > { %2015 = vmatmul.mubr.bf16.vlgmr.msra.gmra.mrb[0].mxu0 %v3622_v11  ;;  %2065 = vmatpush1.bf16.msra.mxu1 %v2915_v9  ;;  %v3007_v9 = vld [vmem:[%s4392_s1 + $0x2dc] ss:$24 sps:$4 sm:$0xff]  }
  0x50   : > { %2024 = vmatpush1.bf16.msra.mxu0 %v2912_v8  ;;  %2066 = vmatprep.subr.bf16.mxu1 %v2923_v13  ;;  %v3004_v8 = vld [vmem:[%s4392_s1 + $0x8d4] ss:$24 sps:$4 sm:$0xff]   ;;  %v3005_v13 = vld [vmem:[%s4392_s1 + $0x2d8] ss:$24 sps:$4 sm:$0xff]  }
  0x51   : > { %2025 = vmatprep.subr.bf16.mxu0 %v2920_v12  ;;  %2096 = vmatprep.mubr.bf16.mxu1 %v3545_v47  ;;  %v3002_v12 = vld [vmem:[%s4392_s1 + $0x8d0] ss:$24 sps:$4 sm:$0xff]  }
  0x52   : > { %2055 = vmatprep.mubr.bf16.mxu0 %v3694_v35 }
  0x53   : > { %2067 = vmatpush1.bf16.msra.mxu1 %v2921_v15  ;;  %v3010_v15 = vld [vmem:[%s4392_s1 + $0x30c] ss:$24 sps:$4 sm:$0xff]  }
  0x54   : > { %2026 = vmatpush1.bf16.msra.mxu0 %v2918_v14  ;;  %2068 = vmatprep.subr.bf16.mxu1 %v2929_v17  ;;  %v173_v14 = vld [vmem:[%s3536_s26 + $0x20] sm:$0xff] }
  0x55   : > { %2027 = vmatprep.subr.bf16.mxu0 %v2926_v16  ;;  %v3013_v16 = vld [vmem:[%s4392_s1 + $0x14] ss:$24 sps:$4 sm:$0xff]   ;;  %v3818_v17 = vpack.c.bf16 %v173_v14, %v173_v14  ;;  %v3092_v14 = vld [vmem:[%s4392_s1 + $0x5a8] ss:$24 sps:$4 sm:$0xff]  }
  0x57   : > { %2069 = vmatpush1.bf16.msra.mxu1 %v2927_v19  ;;  %v3011_v19 = vld [vmem:[%s4392_s1 + $0x10] ss:$24 sps:$4 sm:$0xff]  }
  0x58   : > { %2028 = vmatpush1.bf16.msra.mxu0 %v2924_v18  ;;  %2070 = vmatprep.subr.bf16.mxu1 %v2935_v21  ;;  %v3008_v18 = vld [vmem:[%s4392_s1 + $0x308] ss:$24 sps:$4 sm:$0xff]   ;;  %v3019_v21 = vld [vmem:[%s4392_s1 + $0x44] ss:$24 sps:$4 sm:$0xff]  }
  0x59   : > { %2029 = vmatprep.subr.bf16.mxu0 %v2932_v20  ;;  %v3016_v20 = vld [vmem:[%s4392_s1 + $0x33c] ss:$24 sps:$4 sm:$0xff]  }
  0x5b   : > { %2071 = vmatpush1.bf16.msra.mxu1 %v2933_v23  ;;  %v3017_v23 = vld [vmem:[%s4392_s1 + $0x40] ss:$24 sps:$4 sm:$0xff]  }
  0x5c   : > { %2030 = vmatpush1.bf16.msra.mxu0 %v2930_v22  ;;  %2072 = vmatprep.subr.bf16.mxu1 %v2941_v25  ;;  %v3014_v22 = vld [vmem:[%s4392_s1 + $0x338] ss:$24 sps:$4 sm:$0xff]   ;;  %v3025_v25 = vld [vmem:[%s4392_s1 + $0x74] ss:$24 sps:$4 sm:$0xff]  }
  0x5d   : > { %2031 = vmatprep.subr.bf16.mxu0 %v2938_v24  ;;  %v3022_v24 = vld [vmem:[%s4392_s1 + $0x36c] ss:$24 sps:$4 sm:$0xff]  }
  0x5f   : > { %2073 = vmatpush1.bf16.msra.mxu1 %v2939_v27  ;;  %v3023_v27 = vld [vmem:[%s4392_s1 + $0x70] ss:$24 sps:$4 sm:$0xff]  }
  0x60   : > { %2032 = vmatpush1.bf16.msra.mxu0 %v2936_v26  ;;  %2074 = vmatprep.subr.bf16.mxu1 %v2947_v29  ;;  %v3020_v26 = vld [vmem:[%s4392_s1 + $0x368] ss:$24 sps:$4 sm:$0xff]   ;;  %v3026_v29 = vld [vmem:[%s4392_s1 + $0x398] ss:$24 sps:$4 sm:$0xff]  }
  0x61   : > { %2033 = vmatprep.subr.bf16.mxu0 %v2944_v28  ;;  %v3028_v28 = vld [vmem:[%s4392_s1 + $0x39c] ss:$24 sps:$4 sm:$0xff]  }
  0x63   : > { %2075 = vmatpush1.bf16.msra.mxu1 %v2945_v31  ;;  %v3034_v31 = vld [vmem:[%s4392_s1 + $0x3cc] ss:$24 sps:$4 sm:$0xff]  }
  0x64   : > { %2034 = vmatpush1.bf16.msra.mxu0 %v2942_v30  ;;  %2076 = vmatprep.subr.bf16.mxu1 %v2953_v33  ;;  %v3029_v30 = vld [vmem:[%s4392_s1 + $0xa0] ss:$24 sps:$4 sm:$0xff]  }
  0x65   : > { %2035 = vmatprep.subr.bf16.mxu0 %v2950_v32  ;;  %v3037_v32 = vld [vmem:[%s4392_s1 + $0xd4] ss:$24 sps:$4 sm:$0xff]   ;;  %v3032_v33 = vld [vmem:[%s4392_s1 + $0x3c8] ss:$24 sps:$4 sm:$0xff]  }
  0x67   : > { %2077 = vmatpush1.bf16.msra.mxu1 %v2951_v37  ;;  %v3043_v37 = vld [vmem:[%s4392_s1 + $0x104] ss:$24 sps:$4 sm:$0xff]  }
  0x68   : > { %2036 = vmatpush1.bf16.msra.mxu0 %v2948_v36  ;;  %2078 = vmatprep.subr.bf16.mxu1 %v2959_v39  ;;  %v3040_v36 = vld [vmem:[%s4392_s1 + $0x3fc] ss:$24 sps:$4 sm:$0xff]   ;;  %v3041_v39 = vld [vmem:[%s4392_s1 + $0x100] ss:$24 sps:$4 sm:$0xff]  }
  0x69   : > { %2037 = vmatprep.subr.bf16.mxu0 %v2956_v38  ;;  %v3038_v38 = vld [vmem:[%s4392_s1 + $0x3f8] ss:$24 sps:$4 sm:$0xff]  }
  0x6b   : > { %2079 = vmatpush1.bf16.msra.mxu1 %v2957_v41  ;;  %v3049_v41 = vld [vmem:[%s4392_s1 + $0x134] ss:$24 sps:$4 sm:$0xff]  }
  0x6c   : > { %2038 = vmatpush1.bf16.msra.mxu0 %v2954_v40  ;;  %2080 = vmatprep.subr.bf16.mxu1 %v2965_v43  ;;  %v3046_v40 = vld [vmem:[%s4392_s1 + $0x42c] ss:$24 sps:$4 sm:$0xff]   ;;  %v3047_v43 = vld [vmem:[%s4392_s1 + $0x130] ss:$24 sps:$4 sm:$0xff]  }
  0x6d   : > { %2039 = vmatprep.subr.bf16.mxu0 %v2962_v42  ;;  %v3044_v42 = vld [vmem:[%s4392_s1 + $0x428] ss:$24 sps:$4 sm:$0xff]  }
  0x6f   : > { %2081 = vmatpush1.bf16.msra.mxu1 %v2963_v45  ;;  %v3055_v45 = vld [vmem:[%s4392_s1 + $0x164] ss:$24 sps:$4 sm:$0xff]  }
  0x70   : > { %2040 = vmatpush1.bf16.msra.mxu0 %v2960_v44  ;;  %2082 = vmatprep.subr.bf16.mxu1 %v2971_v48  ;;  %v3052_v44 = vld [vmem:[%s4392_s1 + $0x45c] ss:$24 sps:$4 sm:$0xff]   ;;  %v3053_v48 = vld [vmem:[%s4392_s1 + $0x160] ss:$24 sps:$4 sm:$0xff]  }
  0x71   : > { %2041 = vmatprep.subr.bf16.mxu0 %v2968_v46  ;;  %v3050_v46 = vld [vmem:[%s4392_s1 + $0x458] ss:$24 sps:$4 sm:$0xff]  }
  0x73   : > { %2083 = vmatpush1.bf16.msra.mxu1 %v2969_v50  ;;  %v3061_v50 = vld [vmem:[%s4392_s1 + $0x194] ss:$24 sps:$4 sm:$0xff]  }
  0x74   : > { %2042 = vmatpush1.bf16.msra.mxu0 %v2966_v49  ;;  %2084 = vmatprep.subr.bf16.mxu1 %v2977_v53  ;;  %v3058_v49 = vld [vmem:[%s4392_s1 + $0x48c] ss:$24 sps:$4 sm:$0xff]   ;;  %v3059_v53 = vld [vmem:[%s4392_s1 + $0x190] ss:$24 sps:$4 sm:$0xff]  }
  0x75   : > { %2043 = vmatprep.subr.bf16.mxu0 %v2974_v52  ;;  %v3056_v52 = vld [vmem:[%s4392_s1 + $0x488] ss:$24 sps:$4 sm:$0xff]  }
  0x77   : > { %2085 = vmatpush1.bf16.msra.mxu1 %v2975_v55  ;;  %v3067_v55 = vld [vmem:[%s4392_s1 + $0x1c4] ss:$24 sps:$4 sm:$0xff]  }
  0x78   : > { %2044 = vmatpush1.bf16.msra.mxu0 %v2972_v54  ;;  %2086 = vmatprep.subr.bf16.mxu1 %v2983_v57  ;;  %v3064_v54 = vld [vmem:[%s4392_s1 + $0x4bc] ss:$24 sps:$4 sm:$0xff]   ;;  %v3065_v57 = vld [vmem:[%s4392_s1 + $0x1c0] ss:$24 sps:$4 sm:$0xff]  }
  0x79   : > { %2045 = vmatprep.subr.bf16.mxu0 %v2980_v56  ;;  %v3062_v56 = vld [vmem:[%s4392_s1 + $0x4b8] ss:$24 sps:$4 sm:$0xff]  }
  0x7b   : > { %2087 = vmatpush1.bf16.msra.mxu1 %v2981_v59  ;;  %v3073_v59 = vld [vmem:[%s4392_s1 + $0x1f4] ss:$24 sps:$4 sm:$0xff]  }
  0x7c   : > { %2046 = vmatpush1.bf16.msra.mxu0 %v2978_v58  ;;  %2088 = vmatprep.subr.bf16.mxu1 %v2989_v61  ;;  %v3070_v58 = vld [vmem:[%s4392_s1 + $0x4ec] ss:$24 sps:$4 sm:$0xff]   ;;  %v3071_v61 = vld [vmem:[%s4392_s1 + $0x1f0] ss:$24 sps:$4 sm:$0xff]  }
  0x7d   : > { %2047 = vmatprep.subr.bf16.mxu0 %v2986_v60  ;;  %v3068_v60 = vld [vmem:[%s4392_s1 + $0x4e8] ss:$24 sps:$4 sm:$0xff]  }
  0x7f   : > { %2089 = vmatpush1.bf16.msra.mxu1 %v2987_v63  ;;  %v3079_v63 = vld [vmem:[%s4392_s1 + $0x224] ss:$24 sps:$4 sm:$0xff]  }
  0x80   : > { %2048 = vmatpush1.bf16.msra.mxu0 %v2984_v62  ;;  %2090 = vmatprep.subr.bf16.mxu1 %v2995_v1  ;;  %v3076_v62 = vld [vmem:[%s4392_s1 + $0x51c] ss:$24 sps:$4 sm:$0xff]   ;;  %v3077_v1 = vld [vmem:[%s4392_s1 + $0x220] ss:$24 sps:$4 sm:$0xff]  }
  0x81   : > { %2049 = vmatprep.subr.bf16.mxu0 %v2992_v0  ;;  %v3074_v0 = vld [vmem:[%s4392_s1 + $0x518] ss:$24 sps:$4 sm:$0xff]  }
  0x83   : > { %2091 = vmatpush1.bf16.msra.mxu1 %v2993_v3  ;;  %v3085_v3 = vld [vmem:[%s4392_s1 + $0x254] ss:$24 sps:$4 sm:$0xff]  }
  0x84   : > { %2050 = vmatpush1.bf16.msra.mxu0 %v2990_v2  ;;  %2092 = vmatprep.subr.bf16.mxu1 %v3001_v5  ;;  %v3082_v2 = vld [vmem:[%s4392_s1 + $0x54c] ss:$24 sps:$4 sm:$0xff]   ;;  %v3083_v5 = vld [vmem:[%s4392_s1 + $0x250] ss:$24 sps:$4 sm:$0xff]  }
  0x85   : > { %2051 = vmatprep.subr.bf16.mxu0 %v2998_v4  ;;  %v3080_v4 = vld [vmem:[%s4392_s1 + $0x548] ss:$24 sps:$4 sm:$0xff]  }
  0x87   : > { %2093 = vmatpush1.bf16.msra.mxu1 %v2999_v7  ;;  %v3091_v7 = vld [vmem:[%s4392_s1 + $0x284] ss:$24 sps:$4 sm:$0xff]  }
  0x88   : > { %2052 = vmatpush1.bf16.msra.mxu0 %v2996_v6  ;;  %2094 = vmatprep.subr.bf16.mxu1 %v3007_v9  ;;  %v3088_v6 = vld [vmem:[%s4392_s1 + $0x57c] ss:$24 sps:$4 sm:$0xff]   ;;  %v3089_v9 = vld [vmem:[%s4392_s1 + $0x280] ss:$24 sps:$4 sm:$0xff]  }
  0x89   : > { %2053 = vmatprep.subr.bf16.mxu0 %v3004_v8  ;;  %v3086_v8 = vld [vmem:[%s4392_s1 + $0x578] ss:$24 sps:$4 sm:$0xff]  }
  0x8b   : > { %2095 = vmatpush1.bf16.msra.mxu1 %v3005_v13  ;;  %v3097_v13 = vld [vmem:[%s4392_s1 + $0x2b4] ss:$24 sps:$4 sm:$0xff]  }
  0x8c   : > { %2054 = vmatpush1.bf16.msra.mxu0 %v3002_v12  ;;  %2105 = vmatprep.subr.bf16.mxu1 %v3010_v15  ;;  %v3094_v12 = vld [vmem:[%s4392_s1 + $0x5ac] ss:$24 sps:$4 sm:$0xff]   ;;  %v3095_v15 = vld [vmem:[%s4392_s1 + $0x2b0] ss:$24 sps:$4 sm:$0xff]  }
  0x8d   : > { %2187 = vmatprep.subr.bf16.mxu0 %v3013_v16  ;;  %v3100_v16 = vld [vmem:[%s4392_s1 + $0x5dc] ss:$24 sps:$4 sm:$0xff]  }
  0x8e   : > { %2097 = vmatmul.mubr.bf16.vlgmr.msra.gmra.mrb[4].mxu1 %v3620_v10 }
  0x8f   : > { %2056 = vmatmul.mubr.bf16.vlgmr.msra.gmra.mrb[0].mxu0 %v3818_v17  ;;  %2106 = vmatpush1.bf16.msra.mxu1 %v3008_v18  ;;  %v3103_v18 = vld [vmem:[%s4392_s1 + $0x2e4] ss:$24 sps:$4 sm:$0xff]  }
  0x90   : > { %2188 = vmatpush1.bf16.msra.mxu0 %v3011_v19  ;;  %2107 = vmatprep.subr.bf16.mxu1 %v3016_v20  ;;  %v3098_v19 = vld [vmem:[%s4392_s1 + $0x5d8] ss:$24 sps:$4 sm:$0xff]  }
  0x91   : > { %2189 = vmatprep.subr.bf16.mxu0 %v3019_v21  ;;  %2137 = vmatprep.mubr.bf16.mxu1 %v3554_v51  ;;  %v3101_v20 = vld [vmem:[%s4392_s1 + $0x2e0] ss:$24 sps:$4 sm:$0xff]   ;;  %v3106_v21 = vld [vmem:[%s4392_s1 + $0x60c] ss:$24 sps:$4 sm:$0xff]  }
  0x92   : > { %2219 = vmatprep.mubr.bf16.mxu0 %v3545_v47  ;;  %v3031_v47 = vld [vmem:[%s4392_s1 + $0xa4] ss:$24 sps:$4 sm:$0xff]  }
  0x93   : > { %2108 = vmatpush1.bf16.msra.mxu1 %v3014_v22  ;;  %v3109_v22 = vld [vmem:[%s4392_s1 + $0x314] ss:$24 sps:$4 sm:$0xff]  }
  0x94   : > { %2190 = vmatpush1.bf16.msra.mxu0 %v3017_v23  ;;  %2109 = vmatprep.subr.bf16.mxu1 %v3022_v24  ;;  %v3104_v23 = vld [vmem:[%s4392_s1 + $0x608] ss:$24 sps:$4 sm:$0xff]  }
  0x95   : > { %2191 = vmatprep.subr.bf16.mxu0 %v3025_v25  ;;  %v3107_v24 = vld [vmem:[%s4392_s1 + $0x310] ss:$24 sps:$4 sm:$0xff]   ;;  %v3112_v25 = vld [vmem:[%s4392_s1 + $0x63c] ss:$24 sps:$4 sm:$0xff]  }
  0x97   : > { %2110 = vmatpush1.bf16.msra.mxu1 %v3020_v26  ;;  %v3115_v26 = vld [vmem:[%s4392_s1 + $0x344] ss:$24 sps:$4 sm:$0xff]  }
  0x98   : > { %2192 = vmatpush1.bf16.msra.mxu0 %v3023_v27  ;;  %2111 = vmatprep.subr.bf16.mxu1 %v3028_v28  ;;  %v3110_v27 = vld [vmem:[%s4392_s1 + $0x638] ss:$24 sps:$4 sm:$0xff]  }
  0x99   : > { %2193 = vmatprep.subr.bf16.mxu0 %v3031_v47  ;;  %v3113_v28 = vld [vmem:[%s4392_s1 + $0x340] ss:$24 sps:$4 sm:$0xff]   ;;  %v3118_v47 = vld [vmem:[%s4392_s1 + $0x66c] ss:$24 sps:$4 sm:$0xff]  }
  0x9b   : > { %2112 = vmatpush1.bf16.msra.mxu1 %v3026_v29  ;;  %v3116_v29 = vld [vmem:[%s4392_s1 + $0x668] ss:$24 sps:$4 sm:$0xff]  }
  0x9c   : > { %2194 = vmatpush1.bf16.msra.mxu0 %v3029_v30  ;;  %2113 = vmatprep.subr.bf16.mxu1 %v3034_v31  ;;  %v3119_v30 = vld [vmem:[%s4392_s1 + $0x370] ss:$24 sps:$4 sm:$0xff]   ;;  %v3124_v31 = vld [vmem:[%s4392_s1 + $0x69c] ss:$24 sps:$4 sm:$0xff]  }
  0x9d   : > { %2195 = vmatprep.subr.bf16.mxu0 %v3037_v32  ;;  %v3122_v32 = vld [vmem:[%s4392_s1 + $0x698] ss:$24 sps:$4 sm:$0xff]  }
  0x9f   : > { %2114 = vmatpush1.bf16.msra.mxu1 %v3032_v33  ;;  %v3125_v33 = vld [vmem:[%s4392_s1 + $0x3a0] ss:$24 sps:$4 sm:$0xff]  }
  0xa0   : > { %2196 = vmatpush1.bf16.msra.mxu0 %v3035_v34  ;;  %2115 = vmatprep.subr.bf16.mxu1 %v3040_v36  ;;  %v3130_v34 = vld [vmem:[%s4392_s1 + $0x6cc] ss:$24 sps:$4 sm:$0xff]  }
  0xa1   : > { %2197 = vmatprep.subr.bf16.mxu0 %v3043_v37  ;;  %v3133_v36 = vld [vmem:[%s4392_s1 + $0x3d4] ss:$24 sps:$4 sm:$0xff]   ;;  %v3128_v37 = vld [vmem:[%s4392_s1 + $0x6c8] ss:$24 sps:$4 sm:$0xff]  }
  0xa3   : > { %2116 = vmatpush1.bf16.msra.mxu1 %v3038_v38  ;;  %v3131_v38 = vld [vmem:[%s4392_s1 + $0x3d0] ss:$24 sps:$4 sm:$0xff]  }
  0xa4   : > { %2198 = vmatpush1.bf16.msra.mxu0 %v3041_v39  ;;  %2117 = vmatprep.subr.bf16.mxu1 %v3046_v40  ;;  %v3136_v39 = vld [vmem:[%s4392_s1 + $0x6fc] ss:$24 sps:$4 sm:$0xff]  }
  0xa5   : > { %2199 = vmatprep.subr.bf16.mxu0 %v3049_v41  ;;  %v3139_v40 = vld [vmem:[%s4392_s1 + $0x404] ss:$24 sps:$4 sm:$0xff]   ;;  %v3134_v41 = vld [vmem:[%s4392_s1 + $0x6f8] ss:$24 sps:$4 sm:$0xff]  }
  0xa7   : > { %2118 = vmatpush1.bf16.msra.mxu1 %v3044_v42  ;;  %v3137_v42 = vld [vmem:[%s4392_s1 + $0x400] ss:$24 sps:$4 sm:$0xff]  }
  0xa8   : > { %2200 = vmatpush1.bf16.msra.mxu0 %v3047_v43  ;;  %2119 = vmatprep.subr.bf16.mxu1 %v3052_v44  ;;  %v3142_v43 = vld [vmem:[%s4392_s1 + $0x72c] ss:$24 sps:$4 sm:$0xff]  }
  0xa9   : > { %2201 = vmatprep.subr.bf16.mxu0 %v3055_v45  ;;  %v3145_v44 = vld [vmem:[%s4392_s1 + $0x434] ss:$24 sps:$4 sm:$0xff]   ;;  %v3140_v45 = vld [vmem:[%s4392_s1 + $0x728] ss:$24 sps:$4 sm:$0xff]  }
  0xab   : > { %2120 = vmatpush1.bf16.msra.mxu1 %v3050_v46  ;;  %v3143_v46 = vld [vmem:[%s4392_s1 + $0x430] ss:$24 sps:$4 sm:$0xff]  }
  0xac   : > { %2202 = vmatpush1.bf16.msra.mxu0 %v3053_v48  ;;  %2121 = vmatprep.subr.bf16.mxu1 %v3058_v49  ;;  %v3148_v48 = vld [vmem:[%s4392_s1 + $0x75c] ss:$24 sps:$4 sm:$0xff]  }
  0xad   : > { %2203 = vmatprep.subr.bf16.mxu0 %v3061_v50  ;;  %v3151_v49 = vld [vmem:[%s4392_s1 + $0x464] ss:$24 sps:$4 sm:$0xff]   ;;  %v3146_v50 = vld [vmem:[%s4392_s1 + $0x758] ss:$24 sps:$4 sm:$0xff]  }
  0xaf   : > { %2122 = vmatpush1.bf16.msra.mxu1 %v3056_v52  ;;  %v3149_v52 = vld [vmem:[%s4392_s1 + $0x460] ss:$24 sps:$4 sm:$0xff]  }
  0xb0   : > { %2204 = vmatpush1.bf16.msra.mxu0 %v3059_v53  ;;  %2123 = vmatprep.subr.bf16.mxu1 %v3064_v54  ;;  %v3154_v53 = vld [vmem:[%s4392_s1 + $0x78c] ss:$24 sps:$4 sm:$0xff]  }
  0xb1   : > { %2205 = vmatprep.subr.bf16.mxu0 %v3067_v55  ;;  %v3157_v54 = vld [vmem:[%s4392_s1 + $0x494] ss:$24 sps:$4 sm:$0xff]   ;;  %v3152_v55 = vld [vmem:[%s4392_s1 + $0x788] ss:$24 sps:$4 sm:$0xff]  }
  0xb3   : > { %2124 = vmatpush1.bf16.msra.mxu1 %v3062_v56  ;;  %v3155_v56 = vld [vmem:[%s4392_s1 + $0x490] ss:$24 sps:$4 sm:$0xff]  }
  0xb4   : > { %2206 = vmatpush1.bf16.msra.mxu0 %v3065_v57  ;;  %2125 = vmatprep.subr.bf16.mxu1 %v3070_v58  ;;  %v3160_v57 = vld [vmem:[%s4392_s1 + $0x7bc] ss:$24 sps:$4 sm:$0xff]  }
  0xb5   : > { %2207 = vmatprep.subr.bf16.mxu0 %v3073_v59  ;;  %v3163_v58 = vld [vmem:[%s4392_s1 + $0x4c4] ss:$24 sps:$4 sm:$0xff]   ;;  %v3158_v59 = vld [vmem:[%s4392_s1 + $0x7b8] ss:$24 sps:$4 sm:$0xff]  }
  0xb7   : > { %2126 = vmatpush1.bf16.msra.mxu1 %v3068_v60  ;;  %v3161_v60 = vld [vmem:[%s4392_s1 + $0x4c0] ss:$24 sps:$4 sm:$0xff]  }
  0xb8   : > { %2208 = vmatpush1.bf16.msra.mxu0 %v3071_v61  ;;  %2127 = vmatprep.subr.bf16.mxu1 %v3076_v62  ;;  %v3166_v61 = vld [vmem:[%s4392_s1 + $0x7ec] ss:$24 sps:$4 sm:$0xff]  }
  0xb9   : > { %2209 = vmatprep.subr.bf16.mxu0 %v3079_v63  ;;  %v3169_v62 = vld [vmem:[%s4392_s1 + $0x4f4] ss:$24 sps:$4 sm:$0xff]   ;;  %v3164_v63 = vld [vmem:[%s4392_s1 + $0x7e8] ss:$24 sps:$4 sm:$0xff]  }
  0xbb   : > { %2128 = vmatpush1.bf16.msra.mxu1 %v3074_v0  ;;  %v3167_v0 = vld [vmem:[%s4392_s1 + $0x4f0] ss:$24 sps:$4 sm:$0xff]  }
  0xbc   : > { %2210 = vmatpush1.bf16.msra.mxu0 %v3077_v1  ;;  %2129 = vmatprep.subr.bf16.mxu1 %v3082_v2  ;;  %v3172_v1 = vld [vmem:[%s4392_s1 + $0x81c] ss:$24 sps:$4 sm:$0xff]  }
  0xbd   : > { %2211 = vmatprep.subr.bf16.mxu0 %v3085_v3  ;;  %v3175_v2 = vld [vmem:[%s4392_s1 + $0x524] ss:$24 sps:$4 sm:$0xff]   ;;  %v3170_v3 = vld [vmem:[%s4392_s1 + $0x818] ss:$24 sps:$4 sm:$0xff]  }
  0xbf   : > { %2130 = vmatpush1.bf16.msra.mxu1 %v3080_v4  ;;  %v3173_v4 = vld [vmem:[%s4392_s1 + $0x520] ss:$24 sps:$4 sm:$0xff]  }
  0xc0   : > { %2212 = vmatpush1.bf16.msra.mxu0 %v3083_v5  ;;  %2131 = vmatprep.subr.bf16.mxu1 %v3088_v6  ;;  %v3178_v5 = vld [vmem:[%s4392_s1 + $0x84c] ss:$24 sps:$4 sm:$0xff]  }
  0xc1   : > { %2213 = vmatprep.subr.bf16.mxu0 %v3091_v7  ;;  %v3181_v6 = vld [vmem:[%s4392_s1 + $0x554] ss:$24 sps:$4 sm:$0xff]   ;;  %v3176_v7 = vld [vmem:[%s4392_s1 + $0x848] ss:$24 sps:$4 sm:$0xff]  }
  0xc3   : > { %2132 = vmatpush1.bf16.msra.mxu1 %v3086_v8  ;;  %v3179_v8 = vld [vmem:[%s4392_s1 + $0x550] ss:$24 sps:$4 sm:$0xff]  }
  0xc4   : > { %2214 = vmatpush1.bf16.msra.mxu0 %v3089_v9  ;;  %2133 = vmatprep.subr.bf16.mxu1 %v3094_v12  ;;  %v3184_v9 = vld [vmem:[%s4392_s1 + $0x87c] ss:$24 sps:$4 sm:$0xff]  }
  0xc5   : > { %2215 = vmatprep.subr.bf16.mxu0 %v3097_v13  ;;  %v3187_v12 = vld [vmem:[%s4392_s1 + $0x584] ss:$24 sps:$4 sm:$0xff]   ;;  %v3182_v13 = vld [vmem:[%s4392_s1 + $0x878] ss:$24 sps:$4 sm:$0xff]  }
  0xc7   : > { %2134 = vmatpush1.bf16.msra.mxu1 %v3092_v14  ;;  %v3185_v14 = vld [vmem:[%s4392_s1 + $0x580] ss:$24 sps:$4 sm:$0xff]  }
  0xc8   : > { %2216 = vmatpush1.bf16.msra.mxu0 %v3095_v15  ;;  %2135 = vmatprep.subr.bf16.mxu1 %v3100_v16  ;;  %v3190_v15 = vld [vmem:[%s4392_s1 + $0x8ac] ss:$24 sps:$4 sm:$0xff]  }
  0xc9   : > { %2217 = vmatprep.subr.bf16.mxu0 %v3103_v18  ;;  %v3193_v16 = vld [vmem:[%s4392_s1 + $0x5b4] ss:$24 sps:$4 sm:$0xff]   ;;  %v3188_v18 = vld [vmem:[%s4392_s1 + $0x8a8] ss:$24 sps:$4 sm:$0xff]  }
  0xcb   : > { %2136 = vmatpush1.bf16.msra.mxu1 %v3098_v19  ;;  %v3191_v19 = vld [vmem:[%s4392_s1 + $0x5b0] ss:$24 sps:$4 sm:$0xff]  }
  0xcc   : > { %2218 = vmatpush1.bf16.msra.mxu0 %v3101_v20  ;;  %2146 = vmatprep.subr.bf16.mxu1 %v3106_v21  ;;  %v3196_v20 = vld [vmem:[%s4392_s1 + $0x8dc] ss:$24 sps:$4 sm:$0xff]  }
  0xcd   : > { %2228 = vmatprep.subr.bf16.mxu0 %v3109_v22  ;;  %v3199_v21 = vld [vmem:[%s4392_s1 + $0x5e4] ss:$24 sps:$4 sm:$0xff]   ;;  %v3194_v22 = vld [vmem:[%s4392_s1 + $0x8d8] ss:$24 sps:$4 sm:$0xff]  }
  0xce   : > { %2138 = vmatmul.mubr.bf16.vlgmr.msra.gmra.mrb[4].mxu1 %v3622_v11 }
  0xcf   : > { %2220 = vmatmul.mubr.bf16.vlgmr.msra.gmra.mrb[4].mxu0 %v3620_v10  ;;  %2147 = vmatpush1.bf16.msra.mxu1 %v3104_v23  ;;  %v3121_v10 = vld [vmem:[%s4392_s1 + $0x374] ss:$24 sps:$4 sm:$0xff]   ;;  %v3197_v23 = vld [vmem:[%s4392_s1 + $0x5e0] ss:$24 sps:$4 sm:$0xff]  }
  0xd0   : > { %2229 = vmatpush1.bf16.msra.mxu0 %v3107_v24  ;;  %2148 = vmatprep.subr.bf16.mxu1 %v3112_v25  ;;  %v3202_v24 = vld [vmem:[%s4392_s1 + $0x614] ss:$24 sps:$4 sm:$0xff]   ;;  %v3200_v25 = vld [vmem:[%s4392_s1 + $0x610] ss:$24 sps:$4 sm:$0xff]  }
  0xd1   : > { %2230 = vmatprep.subr.bf16.mxu0 %v3115_v26  ;;  %2178 = vmatprep.mubr.bf16.mxu1 %v3694_v35  ;;  %v3205_v26 = vld [vmem:[%s4392_s1 + $0x644] ss:$24 sps:$4 sm:$0xff]  }
  0xd2   : > { %2260 = vmatprep.mubr.bf16.mxu0 %v3554_v51  ;;  %v3127_v51 = vld [vmem:[%s4392_s1 + $0x3a4] ss:$24 sps:$4 sm:$0xff]  }
  0xd3   : > { %2149 = vmatpush1.bf16.msra.mxu1 %v3110_v27  ;;  %v3203_v27 = vld [vmem:[%s4392_s1 + $0x640] ss:$24 sps:$4 sm:$0xff]  }
  0xd4   : > { %2231 = vmatpush1.bf16.msra.mxu0 %v3113_v28  ;;  %2150 = vmatprep.subr.bf16.mxu1 %v3118_v47  ;;  %v3208_v28 = vld [vmem:[%s4392_s1 + $0x674] ss:$24 sps:$4 sm:$0xff]   ;;  %v3206_v47 = vld [vmem:[%s4392_s1 + $0x670] ss:$24 sps:$4 sm:$0xff]  }
  0xd5   : > { %2232 = vmatprep.subr.bf16.mxu0 %v3121_v10  ;;  %v3214_v10 = vld [vmem:[%s4392_s1 + $0x6d4] ss:$24 sps:$4 sm:$0xff]  }
  0xd7   : > { %2151 = vmatpush1.bf16.msra.mxu1 %v3116_v29  ;;  %v3212_v29 = vld [vmem:[%s4392_s1 + $0x6d0] ss:$24 sps:$4 sm:$0xff]  }
  0xd8   : > { %2233 = vmatpush1.bf16.msra.mxu0 %v3119_v30  ;;  %2152 = vmatprep.subr.bf16.mxu1 %v3124_v31  ;;  %v3217_v30 = vld [vmem:[%s4392_s1 + $0x704] ss:$24 sps:$4 sm:$0xff]   ;;  %v3215_v31 = vld [vmem:[%s4392_s1 + $0x700] ss:$24 sps:$4 sm:$0xff]  }
  0xd9   : > { %2234 = vmatprep.subr.bf16.mxu0 %v3127_v51  ;;  %v3220_v51 = vld [vmem:[%s4392_s1 + $0x734] ss:$24 sps:$4 sm:$0xff]  }
  0xdb   : > { %2153 = vmatpush1.bf16.msra.mxu1 %v3122_v32 }
  0xdc   : > { %2235 = vmatpush1.bf16.msra.mxu0 %v3125_v33  ;;  %2154 = vmatprep.subr.bf16.mxu1 %v3130_v34  ;;  %v3218_v34 = vld [vmem:[%s4392_s1 + $0x730] ss:$24 sps:$4 sm:$0xff]  }
  0xdd   : > { %2236 = vmatprep.subr.bf16.mxu0 %v3133_v36 }
  0xdf   : > { %2155 = vmatpush1.bf16.msra.mxu1 %v3128_v37  ;;  %v3223_v37 = vld [vmem:[%s4392_s1 + $0x764] ss:$24 sps:$4 sm:$0xff]  }
  0xe0   : > { %2237 = vmatpush1.bf16.msra.mxu0 %v3131_v38  ;;  %2156 = vmatprep.subr.bf16.mxu1 %v3136_v39  ;;  %v3221_v39 = vld [vmem:[%s4392_s1 + $0x760] ss:$24 sps:$4 sm:$0xff]  }
  0xe1   : > { %2238 = vmatprep.subr.bf16.mxu0 %v3139_v40  ;;  %v3226_v40 = vld [vmem:[%s4392_s1 + $0x794] ss:$24 sps:$4 sm:$0xff]  }
  0xe3   : > { %2157 = vmatpush1.bf16.msra.mxu1 %v3134_v41  ;;  %v3224_v41 = vld [vmem:[%s4392_s1 + $0x790] ss:$24 sps:$4 sm:$0xff]  }
  0xe4   : > { %2239 = vmatpush1.bf16.msra.mxu0 %v3137_v42  ;;  %2158 = vmatprep.subr.bf16.mxu1 %v3142_v43  ;;  %v3229_v42 = vld [vmem:[%s4392_s1 + $0x7c4] ss:$24 sps:$4 sm:$0xff]   ;;  %v3227_v43 = vld [vmem:[%s4392_s1 + $0x7c0] ss:$24 sps:$4 sm:$0xff]  }
  0xe5   : > { %2240 = vmatprep.subr.bf16.mxu0 %v3145_v44  ;;  %v3232_v44 = vld [vmem:[%s4392_s1 + $0x7f4] ss:$24 sps:$4 sm:$0xff]  }
  0xe7   : > { %2159 = vmatpush1.bf16.msra.mxu1 %v3140_v45  ;;  %v3230_v45 = vld [vmem:[%s4392_s1 + $0x7f0] ss:$24 sps:$4 sm:$0xff]  }
  0xe8   : > { %2241 = vmatpush1.bf16.msra.mxu0 %v3143_v46  ;;  %2160 = vmatprep.subr.bf16.mxu1 %v3148_v48  ;;  %v3235_v46 = vld [vmem:[%s4392_s1 + $0x824] ss:$24 sps:$4 sm:$0xff]   ;;  %v3233_v48 = vld [vmem:[%s4392_s1 + $0x820] ss:$24 sps:$4 sm:$0xff]  }
  0xe9   : > { %2242 = vmatprep.subr.bf16.mxu0 %v3151_v49  ;;  %v3238_v49 = vld [vmem:[%s4392_s1 + $0x854] ss:$24 sps:$4 sm:$0xff]  }
  0xeb   : > { %2161 = vmatpush1.bf16.msra.mxu1 %v3146_v50  ;;  %v3236_v50 = vld [vmem:[%s4392_s1 + $0x850] ss:$24 sps:$4 sm:$0xff]  }
  0xec   : > { %2243 = vmatpush1.bf16.msra.mxu0 %v3149_v52  ;;  %2162 = vmatprep.subr.bf16.mxu1 %v3154_v53  ;;  %v3241_v52 = vld [vmem:[%s4392_s1 + $0x884] ss:$24 sps:$4 sm:$0xff]   ;;  %v3239_v53 = vld [vmem:[%s4392_s1 + $0x880] ss:$24 sps:$4 sm:$0xff]  }
  0xed   : > { %2244 = vmatprep.subr.bf16.mxu0 %v3157_v54  ;;  %v3244_v54 = vld [vmem:[%s4392_s1 + $0x8b4] ss:$24 sps:$4 sm:$0xff]  }
  0xef   : > { %2163 = vmatpush1.bf16.msra.mxu1 %v3152_v55  ;;  %v3242_v55 = vld [vmem:[%s4392_s1 + $0x8b0] ss:$24 sps:$4 sm:$0xff]  }
  0xf0   : > { %2245 = vmatpush1.bf16.msra.mxu0 %v3155_v56  ;;  %2164 = vmatprep.subr.bf16.mxu1 %v3160_v57  ;;  %v3247_v56 = vld [vmem:[%s4392_s1 + $0x8e4] ss:$24 sps:$4 sm:$0xff]   ;;  %v3245_v57 = vld [vmem:[%s4392_s1 + $0x8e0] ss:$24 sps:$4 sm:$0xff]  }
  0xf1   : > { %2246 = vmatprep.subr.bf16.mxu0 %v3163_v58  ;;  %v471_v58 = vlaneseq }
  0xf3   : > { %2165 = vmatpush1.bf16.msra.mxu1 %v3158_v59  ;;  %v4306_v59 = vshrl.u32 %v471_v58, 7 }
  0xf4   : > { %2247 = vmatpush1.bf16.msra.mxu0 %v3161_v60  ;;  %2166 = vmatprep.subr.bf16.mxu1 %v3166_v61  ;;  %v4312_v61 = vld [vmem:[%s4393_s2] sm:$0x3f] }
  0xf5   : > { %2248 = vmatprep.subr.bf16.mxu0 %v3169_v62  ;;  %v473_v60 = vsub.s32 0, %v4306_v59  ;;  %v477_v62 = vsub.s32 1, %v4306_v59 }
  0xf7   : > { %2167 = vmatpush1.bf16.msra.mxu1 %v3164_v63  ;;  %v474_v63 = vrot.slane %v4312_v61, %v473_v60  ;;  %v3262_v60 = vld [vmem:[%s3536_s26 + $0x10] sm:$0xff] }
  0xf8   : > { %2249 = vmatpush1.bf16.msra.mxu0 %v3167_v0  ;;  %2168 = vmatprep.subr.bf16.mxu1 %v3172_v1  ;;  %v478_v0 = vrot.slane %v4312_v61, %v477_v62 }
  0xf9   : > { %2250 = vmatprep.subr.bf16.mxu0 %v3175_v2 }
  0xfb   : > { %2169 = vmatpush1.bf16.msra.mxu1 %v3170_v3 }
  0xfc   : > { %2251 = vmatpush1.bf16.msra.mxu0 %v3173_v4  ;;  %2170 = vmatprep.subr.bf16.mxu1 %v3178_v5 }
  0xfd   : > { %2252 = vmatprep.subr.bf16.mxu0 %v3181_v6 }
  0xff   : > { %2171 = vmatpush1.bf16.msra.mxu1 %v3176_v7 }
 0x100   : > { %2253 = vmatpush1.bf16.msra.mxu0 %v3179_v8  ;;  %2172 = vmatprep.subr.bf16.mxu1 %v3184_v9 }
 0x101   : > { %2254 = vmatprep.subr.bf16.mxu0 %v3187_v12 }
 0x103   : > { %2173 = vmatpush1.bf16.msra.mxu1 %v3182_v13 }
 0x104   : > { %2255 = vmatpush1.bf16.msra.mxu0 %v3185_v14  ;;  %2174 = vmatprep.subr.bf16.mxu1 %v3190_v15 }
 0x105   : > { %2256 = vmatprep.subr.bf16.mxu0 %v3193_v16 }
 0x107   : > { %2175 = vmatpush1.bf16.msra.mxu1 %v3188_v18 }
 0x108   : > { %2257 = vmatpush1.bf16.msra.mxu0 %v3191_v19  ;;  %2176 = vmatprep.subr.bf16.mxu1 %v3196_v20 }
 0x109   : > { %2258 = vmatprep.subr.bf16.mxu0 %v3199_v21 }
 0x10b   : > { %2177 = vmatpush1.bf16.msra.mxu1 %v3194_v22 }
 0x10c   : > { %2259 = vmatpush1.bf16.msra.mxu0 %v3197_v23 }
 0x10d   : > { %2269 = vmatprep.subr.bf16.mxu0 %v3202_v24 }
 0x10e   : > { %2179 = vmatmul.mubr.bf16.vlgmr.msra.gmra.mrb[4].mxu1 %v3818_v17 }
 0x10f   : > { %2261 = vmatmul.mubr.bf16.vlgmr.msra.gmra.mrb[4].mxu0 %v3622_v11  ;;  %v3211_v11 = vld [vmem:[%s4392_s1 + $0x6a4] ss:$24 sps:$4 sm:$0xff]  }
 0x110   : > { %2270 = vmatpush1.bf16.msra.mxu0 %v3200_v25  ;;  %2301 = vmatprep.mubr.bf16.mxu0 %v3694_v35  ;;  %v3209_v35 = vld [vmem:[%s4392_s1 + $0x6a0] ss:$24 sps:$4 sm:$0xff]  }
 0x111   : > { %2271 = vmatprep.subr.bf16.mxu0 %v3205_v26 }
 0x114   : > { %2272 = vmatpush1.bf16.msra.mxu0 %v3203_v27 }
 0x115   : > { %2273 = vmatprep.subr.bf16.mxu0 %v3208_v28 }
 0x118   : > { %2274 = vmatpush1.bf16.msra.mxu0 %v3206_v47  ;;  %v3260_v47 = vld [vmem:[%s3536_s26] sm:$0xff] }
 0x119   : > { %2275 = vmatprep.subr.bf16.mxu0 %v3211_v11 }
 0x11c   : > { %2276 = vmatpush1.bf16.msra.mxu0 %v3209_v35  ;;  %v3261_v35 = vld [vmem:[%s3536_s26 + $0x8] sm:$0xff] }
 0x11d   : > { %2277 = vmatprep.subr.bf16.mxu0 %v3214_v10 }
 0x120   : > { %2278 = vmatpush1.bf16.msra.mxu0 %v3212_v29  ;;  %v481_v29 = vsub.s32 2, %v4306_v59 }
 0x121   : > { %2279 = vmatprep.subr.bf16.mxu0 %v3217_v30  ;;  %v1975_v32 = vpop.f32.mrb[0].mxu1  ;;  %v485_v30 = vsub.s32 3, %v4306_v59 }
 0x122   : > { %v1977_v33 = vpop.f32.mrb[1].mxu1  ;;  %v1976_v1 = vadd.f32 %v1975_v32, %v474_v63  ;;  %v3263_v63 = vld [vmem:[%s3536_s26 + $0x18] sm:$0xff] }
 0x123   : > { %v1979_v36 = vpop.f32.mrb[2].mxu1  ;;  %v1978_v2 = vadd.f32 %v1977_v33, %v478_v0 }
 0x124   : > { %2280 = vmatpush1.bf16.msra.mxu0 %v3215_v31  ;;  %v1980_v38 = vpop.f32.mrb[3].mxu1  ;;  %v482_v31 = vrot.slane %v4312_v61, %v481_v29 }
 0x125   : > { %2281 = vmatprep.subr.bf16.mxu0 %v3220_v51  ;;  %v486_v51 = vrot.slane %v4312_v61, %v485_v30 }
 0x128   : > { %2282 = vmatpush1.bf16.msra.mxu0 %v3218_v34 }
 0x129   : > { %2283 = vmatprep.subr.bf16.mxu0 %v3223_v37 }
 0x12c   : > { %2284 = vmatpush1.bf16.msra.mxu0 %v3221_v39 }
 0x12d   : > { %2285 = vmatprep.subr.bf16.mxu0 %v3226_v40 }
 0x130   : > { %2286 = vmatpush1.bf16.msra.mxu0 %v3224_v41 }
 0x131   : > { %2287 = vmatprep.subr.bf16.mxu0 %v3229_v42 }
 0x134   : > { %2288 = vmatpush1.bf16.msra.mxu0 %v3227_v43 }
 0x135   : > { %2289 = vmatprep.subr.bf16.mxu0 %v3232_v44 }
 0x138   : > { %2290 = vmatpush1.bf16.msra.mxu0 %v3230_v45 }
 0x139   : > { %2291 = vmatprep.subr.bf16.mxu0 %v3235_v46 }
 0x13c   : > { %2292 = vmatpush1.bf16.msra.mxu0 %v3233_v48 }
 0x13d   : > { %2293 = vmatprep.subr.bf16.mxu0 %v3238_v49 }
 0x140   : > { %2294 = vmatpush1.bf16.msra.mxu0 %v3236_v50 }
 0x141   : > { %2295 = vmatprep.subr.bf16.mxu0 %v3241_v52 }
 0x144   : > { %2296 = vmatpush1.bf16.msra.mxu0 %v3239_v53 }
 0x145   : > { %2297 = vmatprep.subr.bf16.mxu0 %v3244_v54 }
 0x148   : > { %2298 = vmatpush1.bf16.msra.mxu0 %v3242_v55 }
 0x149   : > { %2299 = vmatprep.subr.bf16.mxu0 %v3247_v56 }
 0x14c   : > { %2300 = vmatpush1.bf16.msra.mxu0 %v3245_v57 }
 0x14f   : > { %2302 = vmatmul.mubr.bf16.vlgmr.msra.gmra.mrb[4].mxu0 %v3818_v17 }
 0x162   : > { %v2057_v3 = vpop.f32.mrb[0].mxu0 }
 0x163   : > { %v2747_v17 = vadd.f32 %v2057_v3, %v1976_v1  ;;  %v2059_v4 = vpop.f32.mrb[1].mxu0  ;;  %v489_v1 = vsub.s32 4, %v4306_v59 }
 0x164   : > { %v2749_v5 = vadd.f32 %v2059_v4, %v1978_v2  ;;  %v2061_v6 = vpop.f32.mrb[2].mxu0  ;;  %v493_v2 = vsub.s32 5, %v4306_v59 }
 0x165   : > { %v2316_v7 = vmul.f32 0.044715, %v2747_v17  ;;  %v2062_v8 = vpop.f32.mrb[3].mxu0  ;;  %v2310_v23 = vmul.f32 0.5, %v2747_v17  ;;  %v490_v3 = vrot.slane %v4312_v61, %v489_v1 }
 0x166   : > { %v2317_v9 = vmul.f32 0.044715, %v2749_v5  ;;  %v2311_v25 = vmul.f32 0.5, %v2749_v5 }
 0x167   : > { %v2322_v12 = vmul.f32 %v2747_v17, %v2316_v7 }
 0x168   : > { %v2323_v13 = vmul.f32 %v2749_v5, %v2317_v9 }
 0x169   : > { %v2328_v14 = vmul.f32 %v2747_v17, %v2322_v12 }
 0x16a   : > { %v2329_v15 = vmul.f32 %v2749_v5, %v2323_v13 }
 0x16b   : > { %v2334_v16 = vadd.f32 %v2747_v17, %v2328_v14  ;;  %v494_v17 = vrot.slane %v4312_v61, %v493_v2 }
 0x16c   : > { %v2335_v18 = vadd.f32 %v2749_v5, %v2329_v15 }
 0x16d   : > { %v2340_v19 = vmul.f32 0.7978846, %v2334_v16 }
 0x16e   : > { %v2341_v20 = vmul.f32 0.7978846, %v2335_v18 }
 0x16f   : > { %3248 = vtanh.f32 %v2340_v19 }
 0x170   : > { %3250 = vtanh.f32 %v2341_v20 }
 0x179   : > { %v3249_v21 = vpop.eup %3248 }
 0x17a   : > { %v3251_v22 = vpop.eup %3250  ;;  %v2352_v24 = vadd.f32 1.0, %v3249_v21 }
 0x17b   : > { %v2353_v26 = vadd.f32 1.0, %v3251_v22 }
 0x17c   : > { %v2358_v27 = vmul.f32 %v2352_v24, %v2310_v23 }
 0x17d   : > { %v2359_v28 = vmul.f32 %v2353_v26, %v2311_v25 }
 0x17e   : > { %v2364_v11 = vadd.f32 %v3260_v47, %v2358_v27  ;;  %v3264_v47 = vld [vmem:[%s3536_s26 + $0x20] sm:$0xff] }
 0x17f   : > { %v2365_v10 = vadd.f32 %v3261_v35, %v2359_v28  ;;  %v3265_v35 = vld [vmem:[%s3536_s26 + $0x28] sm:$0xff]  ;;  %s3330_s26 = smov [#allocation2]  }
 0x180   : > { %2370 = vst [vmem:[%s4322_s25] sm:$0xff] %v2364_v11  ;;  %s3270_s6 = sshll.u32 %s3330_s26, 4  ;;  %s3271_s6 = int_to_ptr.vmem [resolvable:$false] %s3270_s6 }
 0x181   : > { %2371 = vst [vmem:[%s4322_s25 + $0x8] sm:$0xff] %v2365_v10  ;;  %s3272_s7 = scalar_lea.vmem %s3271_s6, 1536  ;;  %p3273_p0 = scmp.lt.s32.totalorder %s4347_s28, %s3271_s6 }
 0x182   : > { %p3274_p1 = scmp.lt.s32.totalorder %s3272_s7, %s3266_s5 }
 0x184   : > { %p3275_p2 = por %p3274_p1, %p3273_p0 }
 0x186   : > { %p3276_p3 = pnand %p3275_p2, %p3269_p13 }
 0x1e1   : > { %v2180_v32 = vpop.f32.mrb[4].mxu1 }
 0x1e2   : > { %v2750_v33 = vadd.f32 %v2180_v32, %v482_v31  ;;  %v2182_v34 = vpop.f32.mrb[5].mxu1 }
 0x1e3   : > { %v2751_v36 = vadd.f32 %v2182_v34, %v486_v51  ;;  %v2184_v37 = vpop.f32.mrb[6].mxu1 }
 0x1e4   : > { %v2318_v38 = vmul.f32 0.044715, %v2750_v33  ;;  %v2185_v39 = vpop.f32.mrb[7].mxu1  ;;  %v2312_v53 = vmul.f32 0.5, %v2750_v33 }
 0x1e5   : > { %v2319_v40 = vmul.f32 0.044715, %v2751_v36  ;;  %v2313_v55 = vmul.f32 0.5, %v2751_v36 }
 0x1e6   : > { %v2324_v41 = vmul.f32 %v2750_v33, %v2318_v38 }
 0x1e7   : > { %v2325_v42 = vmul.f32 %v2751_v36, %v2319_v40 }
 0x1e8   : > { %v2330_v43 = vmul.f32 %v2750_v33, %v2324_v41 }
 0x1e9   : > { %v2331_v44 = vmul.f32 %v2751_v36, %v2325_v42 }
 0x1ea   : > { %v2336_v45 = vadd.f32 %v2750_v33, %v2330_v43 }
 0x1eb   : > { %v2337_v46 = vadd.f32 %v2751_v36, %v2331_v44 }
 0x1ec   : > { %v2342_v48 = vmul.f32 0.7978846, %v2336_v45 }
 0x1ed   : > { %v2343_v49 = vmul.f32 0.7978846, %v2337_v46 }
 0x1ee   : > { %3252 = vtanh.f32 %v2342_v48 }
 0x1ef   : > { %3254 = vtanh.f32 %v2343_v49 }
 0x1f8   : > { %v3253_v50 = vpop.eup %3252 }
 0x1f9   : > { %v3255_v52 = vpop.eup %3254  ;;  %v2354_v54 = vadd.f32 1.0, %v3253_v50 }
 0x1fa   : > { %v2355_v56 = vadd.f32 1.0, %v3255_v52 }
 0x1fb   : > { %v2360_v57 = vmul.f32 %v2354_v54, %v2312_v53 }
 0x1fc   : > { %v2361_v58 = vmul.f32 %v2355_v56, %v2313_v55 }
 0x1fd   : > { %v2366_v62 = vadd.f32 %v3262_v60, %v2360_v57 }
 0x1fe   : > { %v2367_v0 = vadd.f32 %v3263_v63, %v2361_v58 }
 0x1ff   : > { %2372 = vst [vmem:[%s4322_s25 + $0x10] sm:$0xff] %v2366_v62 }
 0x200   : > { %2373 = vst [vmem:[%s4322_s25 + $0x18] sm:$0xff] %v2367_v0 }
 0x222   : > { %v2303_v4 = vpop.f32.mrb[4].mxu0 }
 0x223   : > { %v2752_v5 = vadd.f32 %v2303_v4, %v490_v3  ;;  %v2305_v6 = vpop.f32.mrb[5].mxu0 }
 0x224   : > { %v2753_v7 = vadd.f32 %v2305_v6, %v494_v17  ;;  %v2307_v8 = vpop.f32.mrb[6].mxu0 }
 0x225   : > { %v2320_v9 = vmul.f32 0.044715, %v2752_v5  ;;  %v2308_v12 = vpop.f32.mrb[7].mxu0  ;;  %v2314_v23 = vmul.f32 0.5, %v2752_v5 }
 0x226   : > { %v2321_v13 = vmul.f32 0.044715, %v2753_v7  ;;  %v2315_v25 = vmul.f32 0.5, %v2753_v7 }
 0x227   : > { %v2326_v14 = vmul.f32 %v2752_v5, %v2320_v9 }
 0x228   : > { %v2327_v15 = vmul.f32 %v2753_v7, %v2321_v13 }
 0x229   : > { %v2332_v16 = vmul.f32 %v2752_v5, %v2326_v14 }
 0x22a   : > { %v2333_v18 = vmul.f32 %v2753_v7, %v2327_v15 }
 0x22b   : > { %v2338_v19 = vadd.f32 %v2752_v5, %v2332_v16 }
 0x22c   : > { %v2339_v59 = vadd.f32 %v2753_v7, %v2333_v18 }
 0x22d   : > { %v2344_v20 = vmul.f32 0.7978846, %v2338_v19 }
 0x22e   : > { %v2345_v61 = vmul.f32 0.7978846, %v2339_v59 }
 0x22f   : > { %3256 = vtanh.f32 %v2344_v20 }
 0x230   : > { %3258 = vtanh.f32 %v2345_v61 }
 0x239   : > { %v3257_v21 = vpop.eup %3256 }
 0x23a   : > { %v3259_v22 = vpop.eup %3258  ;;  %v2356_v24 = vadd.f32 1.0, %v3257_v21 }
 0x23b   : > { %v2357_v26 = vadd.f32 1.0, %v3259_v22 }
 0x23c   : > { %v2362_v27 = vmul.f32 %v2356_v24, %v2314_v23 }
 0x23d   : > { %v2363_v28 = vmul.f32 %v2357_v26, %v2315_v25 }
 0x23e   : > { %v2368_v11 = vadd.f32 %v3264_v47, %v2362_v27 }
 0x23f   : > { %v2369_v10 = vadd.f32 %v3265_v35, %v2363_v28 }
 0x240   : > { %2374 = vst [vmem:[%s4322_s25 + $0x20] sm:$0xff] %v2368_v11 }
 0x241   : > { %2375 = vst [vmem:[%s4322_s25 + $0x28] sm:$0xff] %v2369_v10 }
 0x242   : > { %3279 = shalt.err (!%p3276_p3)
}
 0x243   : > { %s3280_s8 = scalar_lea.hbm %s4345_s4, 768  ;;  %s3284_s11 = scalar_lea.hbm %s4394_s3, 1536 }
 0x244   : > { %p3281_p4 = scmp.ne.s32.totalorder %s4345_s4, %s3280_s8  ;;  %p3285_p9 = scmp.lt.u32.totalorder %s4345_s4, %s4394_s3 }
 0x245   : > { %p3286_p10 = scmp.lt.u32.totalorder %s3284_s11, %s3280_s8  ;;  %p3288_p12 = scmp.lt.u32.totalorder %s3280_s8, %s4345_s4 }
 0x246   : > { %p3282_p7 = pnand %p3281_p4, %p3389_p5 }
 0x247   : > { %p3287_p11 = por %p3286_p10, %p3285_p9 }
 0x248   : > { %p3283_p8 = pneg %p3282_p7 }
 0x249   : > { %p3289_p13 = por %p3288_p12, %p3287_p11 }
 0x24b   : > { %p3290_p0 = pnand %p3289_p13, %p3283_p8 }
 0x24d   : > { %3293 = shalt.err (!%p3290_p0)
}
 0x24e   : > { %2777 = dma.vmem_to_hbm [thread:$0]  (%p3389_p5), %s4347_s28, 768, %s4345_s4, %s2377_s16  }
 0x24f PF: > { %p2783_p1 = scmp.ge.s32.totalorder %s3328_s15, 2  ;;  %s2403_s20 = sand.u32 1, %s3316_s12  }
 0x250   : > { %s2404_s24 = scalar_lea.sflag [#allocation3], %s2403_s20 }
 0x251   : > { %p2780_p2 = pnand %p2783_p1, %p3393_p6 }
 0x253   : > { %3311 = dma.done.wait (!%p2780_p2), %s2404_s24, 768  }
 0x254   : > { %3313 = vsyncadd (!%p2780_p2), %s2404_s24, 4294966528  ;;  %p13_p3 = scmp.ge.s32.totalorder %s3376_s18, 4   ;;  %s4397_s12 = smov %s3320_s13 }
 0x255   : > { %s4398_s13 = smov %s3324_s14  ;;  %s4399_s14 = smov %s3387_s21 }
 0x256   : > { %s4400_s15 = smov %s3376_s18  ;;  %15 = sbr.rel (!%p13_p3) target bundleno = 3 (0x3), region = 67 }
 0x25d   :  { %2409 = vsyncpa [#allocation3], 1 }
 0x25e   :  { %2411 = vsyncpa [#allocation3 + $0x1], 1 }

</bundles_post_ra>
